<compile_context>
chip_gen: v7x
topology: tpu7x:2x2x1
jax: 0.10.0
libtpu: 0.0.40
codegen_flags: <defaults>
</compile_context>

<pallas_src>
import functools

import jax
import jax.numpy as jnp
from jax import lax
from jax.experimental import pallas as pl
from jax.experimental.pallas import tpu as pltpu

KSIZE = 7
PAD = 3            # torch Conv1d(kernel_size=7, padding=3)
HALO = 8           # extra rows needed per tile (6 of conv context, 8 for sublane alignment)
EPS = 1e-6


def _round_up(x, m):
    return (x + m - 1) // m * m


def _vmem_limit_bytes():
    # ~3/4 of physical VMEM: 48 MiB on v7x (64 MiB), 96 MiB on v5e/v6e (128 MiB).
    try:
        cap = pltpu.get_tpu_info().vmem_capacity_bytes
    except Exception:
        cap = 64 * 1024 * 1024
    return int(cap) * 3 // 4


def convnext_block_kernel(xm_ref, xt_ref, scale_ref, shift_ref, dww_ref, dwb_ref,
                          w1_ref, b1_ref, w2_ref, b2_ref, out_ref, *, c_real):
    tT = out_ref.shape[1]
    Cp = out_ref.shape[2]

    # Main tile rows [s, s+tT) plus the 8-row halo tail [s+tT, s+tT+8) of the
    # zero-padded input (row j here == original time s + j - 3).
    xp = jnp.concatenate([xm_ref[0], xt_ref[0]], axis=0)        # (tT + HALO, Cp) f32
    residual = xp[PAD:PAD + tT, :]                              # original input rows

    # --- depthwise conv1d (k=7, pad=3, groups=dim): 7 shifted multiply-adds ---
    # TODO(perf): if the bundle dump shows the unaligned sublane slices
    # materializing copies, reformulate the taps with pltpu.roll (XLU slot).
    dww = dww_ref[...]                                          # (KSIZE, Cp)
    acc = xp[0:tT, :] * dww[0][None, :]
    for k in range(1, KSIZE):                                   # static unroll of 7 taps
        acc = acc + xp[k:k + tT, :] * dww[k][None, :]
    acc = acc + dwb_ref[...]                                    # (1, Cp) bias

    # --- LayerNorm over the *real* channels (padded lanes hold exact zeros),
    #     then (Ada) scale / shift (padded lanes of scale/shift are zero). ---
    inv_c = 1.0 / c_real
    mean = jnp.sum(acc, axis=-1, keepdims=True) * inv_c
    centered = acc - mean
    if c_real != Cp:
        lane = lax.broadcasted_iota(jnp.int32, (1, Cp), 1)
        centered_m = jnp.where(lane < c_real, centered, 0.0)
    else:
        centered_m = centered
    var = jnp.sum(centered_m * centered_m, axis=-1, keepdims=True) * inv_c
    xn = centered * lax.rsqrt(var + EPS)
    xn = xn * scale_ref[0] + shift_ref[0]                       # (tT,Cp)*(1,Cp)+(1,Cp)

    # --- pointwise MLP: Linear -> GELU(tanh, EUP) -> Linear (bf16 MXU, f32 acc).
    #     gamma is pre-folded into w2/b2.  (For very large I, chunk over I here.)
    h = jnp.dot(xn.astype(jnp.bfloat16), w1_ref[...],
                preferred_element_type=jnp.float32) + b1_ref[...]
    h = jax.nn.gelu(h, approximate=True)
    y = jnp.dot(h.astype(jnp.bfloat16), w2_ref[...],
                preferred_element_type=jnp.float32) + b2_ref[...]

    out_ref[0] = (residual + y).astype(out_ref.dtype)


def prepare_convnext_params(dw_w, dw_b, w1, b1, w2, b2, gamma):
    """One-time repack of PyTorch-layout weights into kernel layouts:
    channel/intermediate dims zero-padded to multiples of 128, matmul weights
    cast to bf16, layer-scale gamma folded into w2/b2."""
    C = dw_w.shape[0]
    I = w1.shape[0]
    Cp = _round_up(C, 128)
    Ip = _round_up(I, 128)

    dw_kc = jnp.transpose(dw_w[:, 0, :], (1, 0)).astype(jnp.float32)        # (K, C)
    dw_kc = jnp.pad(dw_kc, ((0, 0), (0, Cp - C)))
    dw_bp = jnp.pad(dw_b.astype(jnp.float32), (0, Cp - C)).reshape(1, Cp)

    w1_k = jnp.pad(w1.T.astype(jnp.float32), ((0, Cp - C), (0, Ip - I)))    # (Cp, Ip)
    b1_p = jnp.pad(b1.astype(jnp.float32), (0, Ip - I)).reshape(1, Ip)

    w2g = w2.T.astype(jnp.float32) * gamma[None, :].astype(jnp.float32)     # fold gamma
    w2_k = jnp.pad(w2g, ((0, Ip - I), (0, Cp - C)))                         # (Ip, Cp)
    b2_p = jnp.pad((b2 * gamma).astype(jnp.float32), (0, Cp - C)).reshape(1, Cp)

    return dict(C=C, I=I, Cp=Cp, Ip=Ip,
                dw_w=dw_kc, dw_b=dw_bp,
                w1=w1_k.astype(jnp.bfloat16), b1=b1_p,
                w2=w2_k.astype(jnp.bfloat16), b2=b2_p)


def convnext_block(x_nct, scale_bc, shift_bc, params, *, time_tile=512):
    """x_nct: (B, C, T) in the PyTorch layout; scale_bc/shift_bc: (B, C) AdaLN
    conditioning; params: output of prepare_convnext_params."""
    B, C, T = x_nct.shape
    assert C == params["C"]
    Cp, Ip = params["Cp"], params["Ip"]

    # Time tiling: tT rows per grid step (multiple of 8).  On v7x prefer
    # B * nT >= 2 so both TensorCores get work.
    tT = min(_round_up(time_tile, 8), _round_up(T, 8))
    T_pad = _round_up(T, tT)
    nT = T_pad // tT

    x_btc = jnp.transpose(x_nct, (0, 2, 1)).astype(jnp.float32)             # (B, T, C)
    # 3 zero rows on the left (conv pad); conv pad + tile round-up + 8-row tail
    # room on the right; channels padded to Cp.  Tail rows beyond T run the
    # LayerNorm on conv-bias-only values -- finite, and sliced off below.
    xp = jnp.pad(x_btc, ((0, 0), (PAD, T_pad + HALO - PAD - T), (0, Cp - C)))
    # xp: (B, T_pad + HALO, Cp)

    scale3 = jnp.pad(scale_bc.astype(jnp.float32), ((0, 0), (0, Cp - C))).reshape(B, 1, Cp)
    shift3 = jnp.pad(shift_bc.astype(jnp.float32), ((0, 0), (0, Cp - C))).reshape(B, 1, Cp)

    kernel = functools.partial(convnext_block_kernel, c_real=C)
    tpb = tT // 8  # tail-block offset, in units of 8-row blocks

    def run(single_buffer_weights):
        wkw = {"pipeline_mode": pl.Buffered(1)} if single_buffer_weights else {}

        def wspec(shape):
            return pl.BlockSpec(shape, lambda b, t: (0,) * len(shape), **wkw)

        in_specs = [
            pl.BlockSpec((1, tT, Cp), lambda b, t: (b, t, 0)),                 # main rows
            pl.BlockSpec((1, HALO, Cp), lambda b, t: (b, (t + 1) * tpb, 0)),   # halo tail
            pl.BlockSpec((1, 1, Cp), lambda b, t: (b, 0, 0)),                  # ada scale
            pl.BlockSpec((1, 1, Cp), lambda b, t: (b, 0, 0)),                  # ada shift
            wspec((KSIZE, Cp)),                                                # dw weight
            wspec((1, Cp)),                                                    # dw bias
            wspec((Cp, Ip)),                                                   # w1 (bf16)
            wspec((1, Ip)),                                                    # b1
            wspec((Ip, Cp)),                                                   # w2*gamma (bf16)
            wspec((1, Cp)),                                                    # b2*gamma
        ]
        return pl.pallas_call(
            kernel,
            out_shape=jax.ShapeDtypeStruct((B, T_pad, Cp), jnp.float32),
            grid_spec=pltpu.PrefetchScalarGridSpec(
                num_scalar_prefetch=0,
                grid=(B, nT),
                in_specs=in_specs,
                out_specs=pl.BlockSpec((1, tT, Cp), lambda b, t: (b, t, 0)),
            ),
            compiler_params=pltpu.CompilerParams(
                # Output tiles are independent -> both axes parallel
                # (sharded across the two TensorCores on v7x).
                dimension_semantics=("parallel", "parallel"),
                vmem_limit_bytes=_vmem_limit_bytes(),
            ),
        )(xp, xp, scale3, shift3, params["dw_w"], params["dw_b"],
          params["w1"], params["b1"], params["w2"], params["b2"])

    retry_errors = (pltpu.LoweringException, NotImplementedError, ValueError, TypeError,
                    getattr(jax.errors, "JaxRuntimeError", RuntimeError))
    try:
        out_btc = run(single_buffer_weights=True)
    except retry_errors:
        # Only the weight single-buffering differs between attempts (same tiling
        # and kernel), so a genuine bug still fails and re-raises here.
        out_btc = run(single_buffer_weights=False)

    return jnp.transpose(out_btc[:, :T, :C], (0, 2, 1)).astype(x_nct.dtype)


def ref_forward(x, cond, p):
    """Pure-JAX f32 reference mirroring the PyTorch module (adanorm path, erf GELU)."""
    B, C, T = x.shape
    y = lax.conv_general_dilated(
        x, p["dw_w"], window_strides=(1,), padding=((PAD, PAD),),
        feature_group_count=C, dimension_numbers=("NCH", "OIH", "NCH"))
    y = y + p["dw_b"][None, :, None]
    yt = jnp.transpose(y, (0, 2, 1))
    mean = yt.mean(-1, keepdims=True)
    var = ((yt - mean) ** 2).mean(-1, keepdims=True)
    xn = (yt - mean) / jnp.sqrt(var + EPS)
    scale = cond @ p["ada_scale_w"].T + p["ada_scale_b"]
    shift = cond @ p["ada_shift_w"].T + p["ada_shift_b"]
    xn = xn * scale[:, None, :] + shift[:, None, :]
    h = xn @ p["w1"].T + p["b1"]
    h = jax.nn.gelu(h, approximate=False)
    o = h @ p["w2"].T + p["b2"]
    o = o * p["gamma"]
    return x + jnp.transpose(o, (0, 2, 1))


if __name__ == "__main__":
    B, DIM, INTER, T, HIDDEN = 2, 64, 128, 100, 16
    layer_scale_init_value = 0.1

    key = jax.random.PRNGKey(0)
    ks = jax.random.split(key, 10)

    # Parameters in PyTorch shapes.  Random deterministic values exercise all
    # paths (the module's own init would make AdaLayerNorm scale=1, shift=0).
    params = {
        "dw_w": jax.random.normal(ks[0], (DIM, 1, KSIZE), jnp.float32) * 0.2,   # Conv1d weight
        "dw_b": jax.random.normal(ks[1], (DIM,), jnp.float32) * 0.1,
        "ada_scale_w": jax.random.normal(ks[2], (DIM, HIDDEN), jnp.float32) * 0.05,
        "ada_scale_b": jnp.ones((DIM,), jnp.float32),
        "ada_shift_w": jax.random.normal(ks[3], (DIM, HIDDEN), jnp.float32) * 0.05,
        "ada_shift_b": jnp.zeros((DIM,), jnp.float32),
        "w1": jax.random.normal(ks[4], (INTER, DIM), jnp.float32) * 0.05,        # pwconv1 weight
        "b1": jax.random.normal(ks[5], (INTER,), jnp.float32) * 0.05,
        "w2": jax.random.normal(ks[6], (DIM, INTER), jnp.float32) * 0.05,        # pwconv2 weight
        "b2": jax.random.normal(ks[7], (DIM,), jnp.float32) * 0.05,
        "gamma": layer_scale_init_value * jnp.ones((DIM,), jnp.float32),
    }

    x = jax.random.normal(ks[8], (B, DIM, T), jnp.float32)       # NCT like PyTorch
    cond = jax.random.normal(ks[9], (B, HIDDEN), jnp.float32)

    # AdaLayerNorm conditioning (tiny Linears) computed as glue.
    # TODO(synk): these (B,hidden)->(B,dim) Linears stay in plain JAX; they are
    # too small to benefit from a Pallas kernel.
    scale_bc = cond @ params["ada_scale_w"].T + params["ada_scale_b"]   # (B, DIM)
    shift_bc = cond @ params["ada_shift_w"].T + params["ada_shift_b"]   # (B, DIM)

    # One-time weight repack (padding to 128 lanes, bf16 cast, gamma folding).
    kparams = prepare_convnext_params(params["dw_w"], params["dw_b"],
                                      params["w1"], params["b1"],
                                      params["w2"], params["b2"],
                                      params["gamma"])

    # time_tile=48 with T=100 -> 3 halo'd tiles per batch (exercises ragged T
    # padding, the multi-tile halo path, and the C=64 -> 128 lane padding).
    out = convnext_block(x, scale_bc, shift_bc, kparams, time_tile=48)
    out = jax.block_until_ready(out)

    ref = jax.block_until_ready(ref_forward(x, cond, params))
    assert out.shape == (B, DIM, T)
    err = float(jnp.max(jnp.abs(out - ref)))
    assert jnp.allclose(out, ref, atol=2e-2, rtol=2e-2), err
    print("KERNEL_OK")
</pallas_src>

<mosaic_0001>
module attributes {stable_mosaic.version = 11 : i64} {
  func.func @convnext_block_kernel(%arg0: i32, %arg1: i32, %arg2: memref<1x48x128xf32, #tpu.memory_space<vmem>>, %arg3: memref<1x8x128xf32, #tpu.memory_space<vmem>>, %arg4: memref<1x1x128xf32, #tpu.memory_space<vmem>>, %arg5: memref<1x1x128xf32, #tpu.memory_space<vmem>>, %arg6: memref<7x128xf32, #tpu.memory_space<vmem>>, %arg7: memref<1x128xf32, #tpu.memory_space<vmem>>, %arg8: memref<128x128xbf16, #tpu.memory_space<vmem>>, %arg9: memref<1x128xf32, #tpu.memory_space<vmem>>, %arg10: memref<128x128xbf16, #tpu.memory_space<vmem>>, %arg11: memref<1x128xf32, #tpu.memory_space<vmem>>, %arg12: memref<1x48x128xf32, #tpu.memory_space<vmem>>) attributes {dimension_semantics = [#tpu.dimension_semantics<parallel>, #tpu.dimension_semantics<parallel>], iteration_bounds = array<i64: 2, 3>, scalar_prefetch = 0 : i64, scratch_operands = 0 : i64, tpu.core_type = #tpu.core_type<tc>, window_params = [{transform_indices = @transform_0, window_bounds = array<i64: 1, 48, 128>}, {transform_indices = @transform_1, window_bounds = array<i64: 1, 8, 128>}, {transform_indices = @transform_2, window_bounds = array<i64: 1, 1, 128>}, {transform_indices = @transform_3, window_bounds = array<i64: 1, 1, 128>}, {pipeline_mode = #tpu.pipeline_mode<synchronous>, transform_indices = @transform_4, window_bounds = array<i64: 7, 128>}, {pipeline_mode = #tpu.pipeline_mode<synchronous>, transform_indices = @transform_5, window_bounds = array<i64: 1, 128>}, {pipeline_mode = #tpu.pipeline_mode<synchronous>, transform_indices = @transform_6, window_bounds = array<i64: 128, 128>}, {pipeline_mode = #tpu.pipeline_mode<synchronous>, transform_indices = @transform_7, window_bounds = array<i64: 1, 128>}, {pipeline_mode = #tpu.pipeline_mode<synchronous>, transform_indices = @transform_8, window_bounds = array<i64: 128, 128>}, {pipeline_mode = #tpu.pipeline_mode<synchronous>, transform_indices = @transform_9, window_bounds = array<i64: 1, 128>}, {transform_indices = @transform_10, window_bounds = array<i64: 1, 48, 128>}]} {
    %c0 = arith.constant 0 : index
    %c0_0 = arith.constant 0 : index
    %c0_1 = arith.constant 0 : index
    %0 = vector.load %arg2[%c0, %c0_0, %c0_1] : memref<1x48x128xf32, #tpu.memory_space<vmem>>, vector<1x48x128xf32>
    %1 = vector.shape_cast %0 : vector<1x48x128xf32> to vector<48x128xf32>
    %c0_2 = arith.constant 0 : index
    %c0_3 = arith.constant 0 : index
    %c0_4 = arith.constant 0 : index
    %2 = vector.load %arg3[%c0_2, %c0_3, %c0_4] : memref<1x8x128xf32, #tpu.memory_space<vmem>>, vector<1x8x128xf32>
    %3 = vector.shape_cast %2 : vector<1x8x128xf32> to vector<8x128xf32>
    %4 = tpu.concatenate %1, %3 in 0 : vector<48x128xf32>, vector<8x128xf32> -> vector<56x128xf32>
    %5 = vector.extract_strided_slice %4 {offsets = [3, 0], sizes = [48, 128], strides = [1, 1]} : vector<56x128xf32> to vector<48x128xf32>
    %c0_5 = arith.constant 0 : index
    %c0_6 = arith.constant 0 : index
    %6 = vector.load %arg6[%c0_5, %c0_6] : memref<7x128xf32, #tpu.memory_space<vmem>>, vector<7x128xf32>
    %7 = vector.extract_strided_slice %4 {offsets = [0, 0], sizes = [48, 128], strides = [1, 1]} : vector<56x128xf32> to vector<48x128xf32>
    %8 = vector.extract_strided_slice %6 {offsets = [0, 0], sizes = [1, 128], strides = [1, 1]} : vector<7x128xf32> to vector<1x128xf32>
    %9 = vector.shape_cast %8 : vector<1x128xf32> to vector<128xf32>
    %10 = vector.shape_cast %9 : vector<128xf32> to vector<1x128xf32>
    %11 = vector.broadcast %10 : vector<1x128xf32> to vector<48x128xf32>
    %12 = arith.mulf %7, %11 : vector<48x128xf32>
    %13 = vector.extract_strided_slice %4 {offsets = [1, 0], sizes = [48, 128], strides = [1, 1]} : vector<56x128xf32> to vector<48x128xf32>
    %14 = vector.extract_strided_slice %6 {offsets = [1, 0], sizes = [1, 128], strides = [1, 1]} : vector<7x128xf32> to vector<1x128xf32>
    %15 = vector.shape_cast %14 : vector<1x128xf32> to vector<128xf32>
    %16 = vector.shape_cast %15 : vector<128xf32> to vector<1x128xf32>
    %17 = vector.broadcast %16 : vector<1x128xf32> to vector<48x128xf32>
    %18 = arith.mulf %13, %17 : vector<48x128xf32>
    %19 = arith.addf %12, %18 : vector<48x128xf32>
    %20 = vector.extract_strided_slice %4 {offsets = [2, 0], sizes = [48, 128], strides = [1, 1]} : vector<56x128xf32> to vector<48x128xf32>
    %21 = vector.extract_strided_slice %6 {offsets = [2, 0], sizes = [1, 128], strides = [1, 1]} : vector<7x128xf32> to vector<1x128xf32>
    %22 = vector.shape_cast %21 : vector<1x128xf32> to vector<128xf32>
    %23 = vector.shape_cast %22 : vector<128xf32> to vector<1x128xf32>
    %24 = vector.broadcast %23 : vector<1x128xf32> to vector<48x128xf32>
    %25 = arith.mulf %20, %24 : vector<48x128xf32>
    %26 = arith.addf %19, %25 : vector<48x128xf32>
    %27 = vector.extract_strided_slice %4 {offsets = [3, 0], sizes = [48, 128], strides = [1, 1]} : vector<56x128xf32> to vector<48x128xf32>
    %28 = vector.extract_strided_slice %6 {offsets = [3, 0], sizes = [1, 128], strides = [1, 1]} : vector<7x128xf32> to vector<1x128xf32>
    %29 = vector.shape_cast %28 : vector<1x128xf32> to vector<128xf32>
    %30 = vector.shape_cast %29 : vector<128xf32> to vector<1x128xf32>
    %31 = vector.broadcast %30 : vector<1x128xf32> to vector<48x128xf32>
    %32 = arith.mulf %27, %31 : vector<48x128xf32>
    %33 = arith.addf %26, %32 : vector<48x128xf32>
    %34 = vector.extract_strided_slice %4 {offsets = [4, 0], sizes = [48, 128], strides = [1, 1]} : vector<56x128xf32> to vector<48x128xf32>
    %35 = vector.extract_strided_slice %6 {offsets = [4, 0], sizes = [1, 128], strides = [1, 1]} : vector<7x128xf32> to vector<1x128xf32>
    %36 = vector.shape_cast %35 : vector<1x128xf32> to vector<128xf32>
    %37 = vector.shape_cast %36 : vector<128xf32> to vector<1x128xf32>
    %38 = vector.broadcast %37 : vector<1x128xf32> to vector<48x128xf32>
    %39 = arith.mulf %34, %38 : vector<48x128xf32>
    %40 = arith.addf %33, %39 : vector<48x128xf32>
    %41 = vector.extract_strided_slice %4 {offsets = [5, 0], sizes = [48, 128], strides = [1, 1]} : vector<56x128xf32> to vector<48x128xf32>
    %42 = vector.extract_strided_slice %6 {offsets = [5, 0], sizes = [1, 128], strides = [1, 1]} : vector<7x128xf32> to vector<1x128xf32>
    %43 = vector.shape_cast %42 : vector<1x128xf32> to vector<128xf32>
    %44 = vector.shape_cast %43 : vector<128xf32> to vector<1x128xf32>
    %45 = vector.broadcast %44 : vector<1x128xf32> to vector<48x128xf32>
    %46 = arith.mulf %41, %45 : vector<48x128xf32>
    %47 = arith.addf %40, %46 : vector<48x128xf32>
    %48 = vector.extract_strided_slice %4 {offsets = [6, 0], sizes = [48, 128], strides = [1, 1]} : vector<56x128xf32> to vector<48x128xf32>
    %49 = vector.extract_strided_slice %6 {offsets = [6, 0], sizes = [1, 128], strides = [1, 1]} : vector<7x128xf32> to vector<1x128xf32>
    %50 = vector.shape_cast %49 : vector<1x128xf32> to vector<128xf32>
    %51 = vector.shape_cast %50 : vector<128xf32> to vector<1x128xf32>
    %52 = vector.broadcast %51 : vector<1x128xf32> to vector<48x128xf32>
    %53 = arith.mulf %48, %52 : vector<48x128xf32>
    %54 = arith.addf %47, %53 : vector<48x128xf32>
    %c0_7 = arith.constant 0 : index
    %c0_8 = arith.constant 0 : index
    %55 = vector.load %arg7[%c0_7, %c0_8] : memref<1x128xf32, #tpu.memory_space<vmem>>, vector<1x128xf32>
    %56 = vector.broadcast %55 : vector<1x128xf32> to vector<48x128xf32>
    %57 = arith.addf %54, %56 : vector<48x128xf32>
    %cst = arith.constant dense<0.000000e+00> : vector<48xf32>
    %58 = vector.multi_reduction <add>, %57, %cst [1] : vector<48x128xf32> to vector<48xf32>
    %59 = vector.shape_cast %58 : vector<48xf32> to vector<48x1xf32>
    %cst_9 = arith.constant 1.562500e-02 : f32
    %60 = vector.broadcast %cst_9 : f32 to vector<48x1xf32>
    %61 = arith.mulf %59, %60 : vector<48x1xf32>
    %62 = vector.broadcast %61 : vector<48x1xf32> to vector<48x128xf32>
    %63 = arith.subf %57, %62 : vector<48x128xf32>
    %64 = tpu.iota {dimensions = array<i32: 1>} : vector<1x128xi32>
    %c64_i32 = arith.constant 64 : i32
    %65 = vector.broadcast %c64_i32 : i32 to vector<1x128xi32>
    %66 = arith.cmpi slt, %64, %65 : vector<1x128xi32>
    %cst_10 = arith.constant 0.000000e+00 : f32
    %67 = vector.shape_cast %66 : vector<1x128xi1> to vector<1x128xi1>
    %68 = vector.broadcast %67 : vector<1x128xi1> to vector<48x128xi1>
    %69 = vector.broadcast %cst_10 : f32 to vector<48x128xf32>
    %70 = arith.select %68, %63, %69 : vector<48x128xi1>, vector<48x128xf32>
    %71 = arith.mulf %70, %70 : vector<48x128xf32>
    %cst_11 = arith.constant dense<0.000000e+00> : vector<48xf32>
    %72 = vector.multi_reduction <add>, %71, %cst_11 [1] : vector<48x128xf32> to vector<48xf32>
    %73 = vector.shape_cast %72 : vector<48xf32> to vector<48x1xf32>
    %cst_12 = arith.constant 1.562500e-02 : f32
    %74 = vector.broadcast %cst_12 : f32 to vector<48x1xf32>
    %75 = arith.mulf %73, %74 : vector<48x1xf32>
    %cst_13 = arith.constant 9.99999997E-7 : f32
    %76 = vector.broadcast %cst_13 : f32 to vector<48x1xf32>
    %77 = arith.addf %75, %76 : vector<48x1xf32>
    %78 = math.rsqrt %77 : vector<48x1xf32>
    %79 = vector.broadcast %78 : vector<48x1xf32> to vector<48x128xf32>
    %80 = arith.mulf %63, %79 : vector<48x128xf32>
    %c0_14 = arith.constant 0 : index
    %c0_15 = arith.constant 0 : index
    %c0_16 = arith.constant 0 : index
    %81 = vector.load %arg4[%c0_14, %c0_15, %c0_16] : memref<1x1x128xf32, #tpu.memory_space<vmem>>, vector<1x1x128xf32>
    %82 = vector.shape_cast %81 : vector<1x1x128xf32> to vector<1x128xf32>
    %83 = vector.broadcast %82 : vector<1x128xf32> to vector<48x128xf32>
    %84 = arith.mulf %80, %83 : vector<48x128xf32>
    %c0_17 = arith.constant 0 : index
    %c0_18 = arith.constant 0 : index
    %c0_19 = arith.constant 0 : index
    %85 = vector.load %arg5[%c0_17, %c0_18, %c0_19] : memref<1x1x128xf32, #tpu.memory_space<vmem>>, vector<1x1x128xf32>
    %86 = vector.shape_cast %85 : vector<1x1x128xf32> to vector<1x128xf32>
    %87 = vector.broadcast %86 : vector<1x128xf32> to vector<48x128xf32>
    %88 = arith.addf %84, %87 : vector<48x128xf32>
    %89 = arith.truncf %88 : vector<48x128xf32> to vector<48x128xbf16>
    %c0_20 = arith.constant 0 : index
    %c0_21 = arith.constant 0 : index
    %90 = vector.load %arg8[%c0_20, %c0_21] : memref<128x128xbf16, #tpu.memory_space<vmem>>, vector<128x128xbf16>
    %cst_22 = arith.constant dense<0.000000e+00> : vector<48x128xf32>
    %91 = tpu.matmul %89, %90, %cst_22 {dimension_numbers = #tpu.dot_dimension_numbers<[1], [0], [0], [1], [0, 0, 1, 1], [], []>} : vector<48x128xbf16>, vector<128x128xbf16>, vector<48x128xf32> -> vector<48x128xf32>
    %c0_23 = arith.constant 0 : index
    %c0_24 = arith.constant 0 : index
    %92 = vector.load %arg9[%c0_23, %c0_24] : memref<1x128xf32, #tpu.memory_space<vmem>>, vector<1x128xf32>
    %93 = vector.broadcast %92 : vector<1x128xf32> to vector<48x128xf32>
    %94 = arith.addf %91, %93 : vector<48x128xf32>
    %95 = arith.mulf %94, %94 : vector<48x128xf32>
    %96 = arith.mulf %94, %95 : vector<48x128xf32>
    %cst_25 = arith.constant 4.471500e-02 : f32
    %97 = vector.broadcast %cst_25 : f32 to vector<48x128xf32>
    %98 = arith.mulf %97, %96 : vector<48x128xf32>
    %99 = arith.addf %94, %98 : vector<48x128xf32>
    %cst_26 = arith.constant 0.797884583 : f32
    %100 = vector.broadcast %cst_26 : f32 to vector<48x128xf32>
    %101 = arith.mulf %100, %99 : vector<48x128xf32>
    %102 = math.tanh %101 : vector<48x128xf32>
    %cst_27 = arith.constant 1.000000e+00 : f32
    %103 = vector.broadcast %cst_27 : f32 to vector<48x128xf32>
    %104 = arith.addf %103, %102 : vector<48x128xf32>
    %cst_28 = arith.constant 5.000000e-01 : f32
    %105 = vector.broadcast %cst_28 : f32 to vector<48x128xf32>
    %106 = arith.mulf %105, %104 : vector<48x128xf32>
    %107 = arith.mulf %94, %106 : vector<48x128xf32>
    %108 = arith.truncf %107 : vector<48x128xf32> to vector<48x128xbf16>
    %c0_29 = arith.constant 0 : index
    %c0_30 = arith.constant 0 : index
    %109 = vector.load %arg10[%c0_29, %c0_30] : memref<128x128xbf16, #tpu.memory_space<vmem>>, vector<128x128xbf16>
    %cst_31 = arith.constant dense<0.000000e+00> : vector<48x128xf32>
    %110 = tpu.matmul %108, %109, %cst_31 {dimension_numbers = #tpu.dot_dimension_numbers<[1], [0], [0], [1], [0, 0, 1, 1], [], []>} : vector<48x128xbf16>, vector<128x128xbf16>, vector<48x128xf32> -> vector<48x128xf32>
    %c0_32 = arith.constant 0 : index
    %c0_33 = arith.constant 0 : index
    %111 = vector.load %arg11[%c0_32, %c0_33] : memref<1x128xf32, #tpu.memory_space<vmem>>, vector<1x128xf32>
    %112 = vector.broadcast %111 : vector<1x128xf32> to vector<48x128xf32>
    %113 = arith.addf %110, %112 : vector<48x128xf32>
    %114 = arith.addf %5, %113 : vector<48x128xf32>
    %c0_34 = arith.constant 0 : index
    %c0_35 = arith.constant 0 : index
    %c0_36 = arith.constant 0 : index
    %115 = vector.load %arg12[%c0_34, %c0_35, %c0_36] : memref<1x48x128xf32, #tpu.memory_space<vmem>>, vector<1x48x128xf32>
    %116 = vector.shape_cast %115 : vector<1x48x128xf32> to vector<48x128xf32>
    %117 = vector.shape_cast %114 : vector<48x128xf32> to vector<1x48x128xf32>
    tpu.vector_store %arg12[%c0_34, %c0_35, %c0_36], %117 {strides = array<i32>} : memref<1x48x128xf32, #tpu.memory_space<vmem>>, vector<1x48x128xf32>,
    return
  }
  func.func @transform_0(%arg0: i32, %arg1: i32) -> (i32, i32, i32) {
    %c0_i32 = arith.constant 0 : i32
    %c0_i32_0 = arith.constant 0 : i32
    return %arg0, %arg1, %c0_i32 : i32, i32, i32
  }
  func.func @transform_1(%arg0: i32, %arg1: i32) -> (i32, i32, i32) {
    %c1_i32 = arith.constant 1 : i32
    %0 = arith.addi %arg1, %c1_i32 : i32
    %c6_i32 = arith.constant 6 : i32
    %1 = arith.muli %0, %c6_i32 : i32
    %c0_i32 = arith.constant 0 : i32
    %c0_i32_0 = arith.constant 0 : i32
    return %arg0, %1, %c0_i32 : i32, i32, i32
  }
  func.func @transform_2(%arg0: i32, %arg1: i32) -> (i32, i32, i32) {
    %c0_i32 = arith.constant 0 : i32
    %c0_i32_0 = arith.constant 0 : i32
    %c0_i32_1 = arith.constant 0 : i32
    return %arg0, %c0_i32, %c0_i32_0 : i32, i32, i32
  }
  func.func @transform_3(%arg0: i32, %arg1: i32) -> (i32, i32, i32) {
    %c0_i32 = arith.constant 0 : i32
    %c0_i32_0 = arith.constant 0 : i32
    %c0_i32_1 = arith.constant 0 : i32
    return %arg0, %c0_i32, %c0_i32_0 : i32, i32, i32
  }
  func.func @transform_4(%arg0: i32, %arg1: i32) -> (i32, i32) {
    %c0_i32 = arith.constant 0 : i32
    %c0_i32_0 = arith.constant 0 : i32
    %c0_i32_1 = arith.constant 0 : i32
    return %c0_i32, %c0_i32_0 : i32, i32
  }
  func.func @transform_5(%arg0: i32, %arg1: i32) -> (i32, i32) {
    %c0_i32 = arith.constant 0 : i32
    %c0_i32_0 = arith.constant 0 : i32
    %c0_i32_1 = arith.constant 0 : i32
    return %c0_i32, %c0_i32_0 : i32, i32
  }
  func.func @transform_6(%arg0: i32, %arg1: i32) -> (i32, i32) {
    %c0_i32 = arith.constant 0 : i32
    %c0_i32_0 = arith.constant 0 : i32
    %c0_i32_1 = arith.constant 0 : i32
    return %c0_i32, %c0_i32_0 : i32, i32
  }
  func.func @transform_7(%arg0: i32, %arg1: i32) -> (i32, i32) {
    %c0_i32 = arith.constant 0 : i32
    %c0_i32_0 = arith.constant 0 : i32
    %c0_i32_1 = arith.constant 0 : i32
    return %c0_i32, %c0_i32_0 : i32, i32
  }
  func.func @transform_8(%arg0: i32, %arg1: i32) -> (i32, i32) {
    %c0_i32 = arith.constant 0 : i32
    %c0_i32_0 = arith.constant 0 : i32
    %c0_i32_1 = arith.constant 0 : i32
    return %c0_i32, %c0_i32_0 : i32, i32
  }
  func.func @transform_9(%arg0: i32, %arg1: i32) -> (i32, i32) {
    %c0_i32 = arith.constant 0 : i32
    %c0_i32_0 = arith.constant 0 : i32
    %c0_i32_1 = arith.constant 0 : i32
    return %c0_i32, %c0_i32_0 : i32, i32
  }
  func.func @transform_10(%arg0: i32, %arg1: i32) -> (i32, i32, i32) {
    %c0_i32 = arith.constant 0 : i32
    %c0_i32_0 = arith.constant 0 : i32
    return %arg0, %arg1, %c0_i32 : i32, i32, i32
  }
}

</mosaic_0001>

<bundles_post_ra>
// kernel: tpu_custom_call.1
= control target key start
LH: loop header
LB: loop body
LE: loop exit
PB: predicated region body
PF: predicated region fallthrough
CT: control target
= control target key end

     0   :  { %s2740_s0 = inlined_call_operand.hbm [shape: f32[2,152,128], index: 0, kind: input, shape index: {}]   ;;  %s2741_s1 = inlined_call_operand.hbm [shape: f32[2,152,128], index: 1, kind: input, shape index: {}]   ;;  %s2742_s2 = inlined_call_operand.vmem [shape: f32[2,1,128], index: 2, kind: input, shape index: {}]   ;;  %s2743_s3 = inlined_call_operand.vmem [shape: f32[2,1,128], index: 3, kind: input, shape index: {}]   ;;  %s2744_s4 = inlined_call_operand.vmem [shape: f32[7,128], index: 4, kind: input, shape index: {}]   ;;  %s2745_s5 = inlined_call_operand.vmem [shape: f32[1,128], index: 5, kind: input, shape index: {}]   ;;  %s2746_s6 = inlined_call_operand.hbm [shape: bf16[128,128], index: 6, kind: input, shape index: {}]   ;;  %s2747_s7 = inlined_call_operand.vmem [shape: f32[1,128], index: 7, kind: input, shape index: {}]   ;;  %s2748_s8 = inlined_call_operand.hbm [shape: bf16[128,128], index: 8, kind: input, shape index: {}]   ;;  %s2749_s9 = inlined_call_operand.vmem [shape: f32[1,128], index: 9, kind: input, shape index: {}]   ;;  %s2750_s10 = inlined_call_operand.hbm [shape: f32[2,144,128], index: 10, kind: output, shape index: {}]  }
   0x1   :  { %2765 = sst [smem:[#allocation25_spill]] %s2742_s2 }
   0x2   :  { %2766 = sst [smem:[#allocation26_spill]] %s2743_s3 }
   0x3   :  { %2767 = sst [smem:[#allocation27_spill]] %s2744_s4 }
   0x4   :  { %2768 = sst [smem:[#allocation28_spill]] %s2745_s5 }
   0x5   :  { %2769 = sst [smem:[#allocation29_spill]] %s2746_s6 }
   0x6   :  { %2770 = sst [smem:[#allocation30_spill]] %s2747_s7 }
   0x7   :  { %2771 = sst [smem:[#allocation31_spill]] %s2748_s8 }
   0x8   :  { %2772 = sst [smem:[#allocation32_spill]] %s2749_s9 }
   0x9   :  { %2773 = sst [smem:[#allocation33_spill]] %s2750_s10 }
   0xa   :  { %15 = vsyncpa [#allocation3], 0 }
   0xb   :  { %17 = vsyncpa [#allocation3 + $0x1], 0 }
   0xc   :  { %18 = vsyncpa [#allocation6], 0 }
   0xd   :  { %20 = vsyncpa [#allocation6 + $0x1], 0 }
   0xe   :  { %21 = vsyncpa [#allocation9], 0 }
   0xf   :  { %22 = vsyncpa [#allocation4], 0 }
  0x10   :  { %24 = vsyncpa [#allocation4 + $0x1], 0  ;;  %s2046_s13 = smov 0   ;;  %s2048_s14 = smov 0  }
  0x11   :  { %s2050_s15 = smov 0   ;;  %s2052_s16 = smov 0  }
  0x12   :  { %s2054_s17 = smov 0   ;;  %s2056_s18 = smov 0  }
  0x13   :  { %s2058_s19 = smov 0   ;;  %s2060_s20 = smov 0  }
  0x14   :  { %s2062_s21 = smov 0   ;;  %s2064_s22 = smov 0  }
  0x15   :  { %s2066_s23 = smov 0  }
  0x16 LB: > { %2774 = sst [smem:[#allocation16_spill]] %s1948_s16  ;;  %s2102_s24 = sadd.s32 4294967295, %s1976_s23   ;;  %s1976_s23 = sphi %s2066_s23, %s30_s23   ;;  %s1972_s22 = sphi %s2064_s22, %s2830_s22   ;;  %s1968_s21 = sphi %s2062_s21, %s2829_s21   ;;  %s1964_s20 = sphi %s2060_s20, %s2828_s20   ;;  %s1960_s19 = sphi %s2058_s19, %s2827_s19   ;;  %s1956_s18 = sphi %s2056_s18, %s2826_s18   ;;  %s1952_s17 = sphi %s2054_s17, %s2825_s17   ;;  %s1948_s16 = sphi %s2052_s16, %s2824_s16   ;;  %s1944_s15 = sphi %s2050_s15, %s2823_s15   ;;  %s1940_s14 = sphi %s2048_s14, %s2822_s14   ;;  %s1936_s13 = sphi %s2046_s13, %s2821_s13  }
  0x17   : > { %2775 = sst [smem:[#allocation17_spill]] %s1960_s19  ;;  %s39_s26 = sadd.s32 1, %s1968_s21 }
  0x18   : > { %2776 = sst [smem:[#allocation18_spill]] %s1964_s20  ;;  %s42_s27 = sadd.s32 1, %s1972_s22 }
  0x19   : > { %p40_p0 = scmp.ge.s32.totalorder %s39_s26, 3  ;;  %s51_s28 = sadd.s32 1, %s1956_s18 }
  0x1a   : > { %p58_p1 = scmp.ne.s32.totalorder %s1956_s18, %s1952_s17  ;;  %p59_p2 = scmp.eq.s32.totalorder %s1976_s23, 0 }
  0x1b   : > { %s2111_s29 = scalar_select %p40_p0, 0, %s39_s26  }
  0x1c   : > { %s2832_s27 = smov (!%p40_p0, %s42_s27), %s1972_s22  ;;  %p2121_p3 = por %p59_p2, %p58_p1 }
  0x1d   : > { %2777 = sst [smem:[#allocation19_spill]] %s2111_s29  ;;  %s47_s30 = ssub.s32 %s1968_s21, %s2111_s29 }
  0x1e   : > { %s2778_s11 = scalar_select %p2121_p3, 1, 0 }
  0x1f   : > { %p44_p4 = scmp.ge.s32.totalorder %s2832_s27, 2  ;;  %p64_p5 = scmp.ne.s32.totalorder %s1952_s17, %s1948_s16 }
  0x20   : > { %p2758_p6 = scmp.eq.s32.totalorder %s2102_s24, 0  ;;  %s75_s12 = smul.u32 6, %s39_s26 }
  0x21   : > { %s2834_s27 = smov (%p44_p4, %s2832_s27), 0  ;;  %s76_s10 = sadd.s32 1, %s2111_s29 }
  0x22   : > { %2779 = sst [smem:[#allocation20_spill]] %s2834_s27  ;;  %p2135_p7 = por %p2758_p6, %p64_p5 }
  0x23   : > { %s46_s19 = ssub.s32 %s1972_s22, %s2834_s27  ;;  %s77_s9 = smul.u32 6, %s76_s10 }
  0x24   : > { %s2780_s25 = scalar_select %p2135_p7, 1, 0 }
  0x25   : > { %s48_s26 = sor.u32 %s47_s30, %s46_s19  ;;  %s83_s7 = sadd.s32 1, %s1944_s15 }
  0x26   : > { %p49_p8 = scmp.eq.s32.totalorder %s48_s26, 0  ;;  %s79_s3 = ssub.s32 %s75_s12, %s77_s9 }
  0x27   : > { %s80_s2 = sor.u32 %s79_s3, %s46_s19  ;;  %p90_p9 = scmp.ne.s32.totalorder %s1944_s15, %s1940_s14 }
  0x28   : > { %s2146_s20 = scalar_select %p49_p8, %s1956_s18, %s51_s28  }
  0x29   : > { %p81_p10 = scmp.eq.s32.totalorder %s80_s2, 0  ;;  %p2150_p11 = por %p90_p9, %p59_p2 }
  0x2a   : > { %2781 = sst [smem:[#allocation21_spill]] %s2146_s20  ;;  %p96_p12 = scmp.ne.s32.totalorder %s1940_s14, %s1936_s13 }
  0x2b   : > { %s2782_s29 = scalar_select %p2150_p11, 1, 0 }
  0x2c   : > { %p300_p13 = scmp.eq.s32.totalorder %s2102_s24, 5  ;;  %p2162_p0 = por %p96_p12, %p2758_p6 }
  0x2d   : > { %s2158_s10 = scalar_select %p81_p10, %s1944_s15, %s83_s7  }
  0x2e   : > { %s2784_s30 = scalar_select %p2162_p0, 1, 0 }
  0x2f   : > { %2783 = sst [smem:[#allocation22_spill]] %s2158_s10  ;;  %p2169_p4 = por %p300_p13, %p58_p1 }
  0x30   : > { %s2787_s2 = sadd.s32 4294967294, %s1976_s23   ;;  %p1439_p2 = scmp.ge.s32.totalorder %s1976_s23, 1 }
  0x31   : > { %s2785_s3 = scalar_select %p2169_p4, 1, 0 }
  0x32   : > { %p306_p8 = scmp.eq.s32.totalorder %s2787_s2, 5  ;;  %p313_p9 = scmp.lt.s32.totalorder %s1976_s23, 7 }
  0x33   : > { %2786 = sst [smem:[#allocation23_spill]] %s2785_s3  ;;  %s1978_s13 = smov [#allocation7]  }
  0x34   : > { %p2180_p7 = por %p306_p8, %p64_p5  ;;  %p2184_p10 = pnand %p1439_p2, %p313_p9 }
  0x35   : > { %s331_s19 = sshll.u32 %s1978_s13, 4  ;;  %s1979_s12 = smov [#allocation8]   ;;  %s332_s19 = int_to_ptr.vmem [resolvable:$true] %s331_s19 }
  0x36   : > { %s2788_s9 = scalar_select %p2180_p7, 1, 0 }
  0x37   : > { %s2790_s7 = scalar_select %p2184_p10, 1, 0 }
  0x38   : > { %2789 = sst [smem:[#allocation24_spill]] %s2788_s9  ;;  %p1573_p1 = pneg %p2184_p10 }
  0x39   : > { %s347_s26 = sshll.u32 %s1979_s12, 4  ;;  %s2792_s6 = sld [smem:[#allocation29_spill]]  ;;  %s2196_s26 = int_to_ptr.vmem [resolvable:$true] %s347_s26 }
  0x3a   : > { %p2192_p12 = pnand %p1573_p1, %p2758_p6 }
  0x3c   : > { %p1729_p13 = pneg %p2192_p12 }
  0x3f   : > { %s1727_s20 = scalar_lea.hbm %s2792_s6, 1024 }
  0x40   : > { %p1728_p5 = scmp.ne.s32.totalorder %s2792_s6, %s1727_s20  ;;  %p1734_p9 = scmp.lt.u32.totalorder %s1727_s20, %s2792_s6 }
  0x42   : > { %p1730_p8 = pnand %p1729_p13, %p1728_p5 }
  0x44   : > { %p1731_p2 = pneg %p1730_p8 }
  0x46   : > { %p1736_p1 = pnand %p1734_p9, %p1731_p2 }
  0x48   : > { %1739 = shalt.err (!%p1736_p1)
}
  0x49   : > { %s1740_s12 = scalar_lea.vmem %s332_s19, 1024  ;;  %p1748_p0 = scmp.lt.s32.totalorder %s332_s19, %s332_s19 }
  0x4a   : > { %p1741_p6 = scmp.ne.s32.totalorder %s332_s19, %s1740_s12  ;;  %p1749_p10 = scmp.lt.s32.totalorder %s1740_s12, %s1740_s12 }
  0x4c   : > { %p1743_p7 = pnand %p1741_p6, %p1729_p13  ;;  %p1750_p11 = por %p1749_p10, %p1748_p0 }
  0x4e   : > { %p1744_p4 = pneg %p1743_p7 }
  0x50   : > { %p1751_p3 = pnand %p1750_p11, %p1744_p4 }
  0x52   : > { %1754 = shalt.err (!%p1751_p3)
}
  0x53   : > { %s1980_s27 = smov 64   ;;  %s1981_s10 = smov 4  }
  0x54   : > { %1576 = dma.hbm_to_vmem [thread:$0]  (!%p2192_p12), %s2792_s6, 1024, %s332_s19, [#allocation6], %s1980_s27, %s1980_s27, %s1981_s10  }
  0x55   : > { %s2793_s8 = sld [smem:[#allocation31_spill]] }
  0x5b   : > { %s1755_s13 = scalar_lea.hbm %s2793_s8, 1024 }
  0x5c   : > { %p1756_p6 = scmp.ne.s32.totalorder %s2793_s8, %s1755_s13  ;;  %p1762_p11 = scmp.lt.u32.totalorder %s1755_s13, %s2793_s8 }
  0x5e   : > { %p1758_p3 = pnand %p1756_p6, %p1729_p13 }
  0x60   : > { %p1759_p7 = pneg %p1758_p3 }
  0x62   : > { %p1764_p0 = pnand %p1762_p11, %p1759_p7 }
  0x64   : > { %1767 = shalt.err (!%p1764_p0)
}
  0x65   : > { %s1768_s19 = scalar_lea.vmem %s2196_s26, 1024  ;;  %p1776_p8 = scmp.lt.s32.totalorder %s2196_s26, %s2196_s26 }
  0x66   : > { %p1769_p4 = scmp.ne.s32.totalorder %s2196_s26, %s1768_s19  ;;  %p1777_p2 = scmp.lt.s32.totalorder %s1768_s19, %s1768_s19 }
  0x68   : > { %p1771_p10 = pnand %p1769_p4, %p1729_p13  ;;  %p1778_p9 = por %p1777_p2, %p1776_p8 }
  0x6a   : > { %p1772_p5 = pneg %p1771_p10 }
  0x6c   : > { %p1779_p1 = pnand %p1778_p9, %p1772_p5 }
  0x6e   : > { %1782 = shalt.err (!%p1779_p1)
}
  0x6f   : > { %1579 = dma.hbm_to_vmem [thread:$0]  (!%p2192_p12), %s2793_s8, 1024, %s2196_s26, [#allocation9], %s1980_s27, %s1980_s27, %s1981_s10  }
  0x70   : > { %p1442_p6 = scmp.ge.s32.totalorder %s1976_s23, 6 }
  0x71   : > { %p2794_p3 = scmp.ne.s32.totalorder (!%p1442_p6), %s2778_s11, 0 }
  0x72   : > { %360 = sbr.rel (%p1442_p6) target bundleno = 180 (0xb4), region = 40 }
  0x79   : > { %363 = sbr.rel (!%p2794_p3) target bundleno = 151 (0x97), region = 44  ;;  %s364_s3 = sand.u32 (%p2794_p3), 1, %s1956_s18  }
  0x7a   : > { %s369_s16 = smul.u32 (%p2794_p3), 6, %s1968_s21  ;;  %s2250_s9 = scalar_lea.sflag (%p2794_p3), [#allocation3], %s364_s3 }
  0x7b   : > { %s1556_s20 = smul.u32 (%p2794_p3), 48, %s364_s3  ;;  %s1787_s6 = scalar_lea.hbm (%p2794_p3), %s2740_s0, 4864 }
  0x7c   : > { %s1557_s2 = smul.u32 (%p2794_p3), 19, %s1972_s22 }
  0x7d   : > { %s368_s28 = scalar_lea.vmem (%p2794_p3), [#allocation2], %s1556_s20 }
  0x7e   : > { %s383_s13 = sshll.u32 (%p2794_p3), %s368_s28, 4  ;;  %s379_s12 = sadd.s32 (%p2794_p3), %s1557_s2, %s369_s16  ;;  %s2253_s13 = int_to_ptr.vmem [resolvable:$true] %s383_s13 }
  0x7f   : > { %s1445_s26 = sshll.u32 (%p2794_p3), %s379_s12, 7 }
  0x80   : > { %s381_s11 = scalar_lea.hbm %s2740_s0, %s1445_s26 }
  0x81   : > { %s1783_s19 = scalar_lea.hbm %s381_s11, 768  ;;  %p1788_p13 = scmp.lt.u32.totalorder %s381_s11, %s2740_s0 }
  0x82   : > { %p1784_p12 = scmp.ne.s32.totalorder %s381_s11, %s1783_s19  ;;  %p1789_p7 = scmp.lt.u32.totalorder %s1787_s6, %s1783_s19 }
  0x83   : > { %p1791_p0 = scmp.lt.u32.totalorder %s1783_s19, %s381_s11 }
  0x84   : > { %p1790_p11 = por %p1789_p7, %p1788_p13 }
  0x86   : > { %p1792_p4 = por %p1791_p0, %p1790_p11 }
  0x88   : > { %p1793_p10 = pnand %p1792_p4, %p1784_p12 }
  0x8a   : > { %1796 = shalt.err (!%p1793_p10)
}
  0x8b   : > { %s1797_s16 = scalar_lea.vmem %s2253_s13, 768  ;;  %s1982_s20 = smov [#allocation2]  }
  0x8c   : > { %p1798_p5 = scmp.ne.s32.totalorder %s2253_s13, %s1797_s16  ;;  %s1801_s28 = sshll.u32 %s1982_s20, 4  ;;  %s1802_s28 = int_to_ptr.vmem [resolvable:$false] %s1801_s28 }
  0x8d   : > { %s1803_s2 = scalar_lea.vmem %s1802_s28, 1536  ;;  %p1804_p8 = scmp.lt.s32.totalorder %s2253_s13, %s1802_s28 }
  0x8e   : > { %p1805_p2 = scmp.lt.s32.totalorder %s1803_s2, %s1797_s16 }
  0x90   : > { %p1806_p9 = por %p1805_p2, %p1804_p8 }
  0x92   : > { %p1807_p1 = pnand %p1806_p9, %p1798_p5 }
  0x94   : > { %1810 = shalt.err (!%p1807_p1)
}
  0x95   : > { %s1983_s6 = smov 128   ;;  %s1984_s8 = smov 8  }
  0x96   : > { %389 = dma.hbm_to_vmem [thread:$0]  %s381_s11, 768, %s2253_s13, %s2250_s9, %s1983_s6, %s1983_s6, %s1984_s8  }
  0x97 PF: > { %s395_s12 = sand.u32 1, %s1944_s15   ;;  %s393_s26 = sand.u32 1, %s1976_s23  }
  0x98   : > { %s1448_s27 = sshll.u32 %s395_s12, 3  ;;  %s1325_s10 = smul.u32 6, %s1968_s21 }
  0x99   : > { %s1326_s19 = smul.u32 19, %s1972_s22  ;;  %s397_s4 = scalar_lea.vmem [#allocation5], %s1448_s27 }
  0x9a   : > { %s408_s5 = sshll.u32 %s397_s4, 4  ;;  %s394_s11 = scalar_lea.sflag [#allocation6], %s393_s26  ;;  %s2273_s5 = int_to_ptr.vmem [resolvable:$true] %s408_s5 }
  0x9b   : > { %s1327_s3 = sadd.s32 %s1326_s19, %s1325_s10  ;;  %p2795_p3 = scmp.ne.s32.totalorder %s2782_s29, 0 }
  0x9c   : > { %s1449_s16 = sshll.u32 %s1327_s3, 7  ;;  %s1815_s12 = scalar_lea.hbm %s2741_s1, 4864 }
  0x9d   : > { %s1329_s9 = scalar_lea.hbm %s2741_s1, %s1449_s16 }
  0x9e   : > { %s1330_s13 = scalar_lea.hbm %s1329_s9, 768  ;;  %s1839_s2 = scalar_lea.hbm %s1329_s9, 896 }
  0x9f   : > { %p1812_p6 = scmp.ne.s32.totalorder %s1330_s13, %s1839_s2  ;;  %p1816_p7 = scmp.lt.u32.totalorder %s1330_s13, %s2741_s1 }
  0xa0   : > { %p1817_p11 = scmp.lt.u32.totalorder %s1815_s12, %s1839_s2  ;;  %p1819_p4 = scmp.lt.u32.totalorder %s1839_s2, %s1330_s13 }
  0xa1   : > { %p1813_p12 = pnand %p1812_p6, %p2795_p3 }
  0xa2   : > { %p1818_p0 = por %p1817_p11, %p1816_p7 }
  0xa3   : > { %p1814_p13 = pneg %p1813_p12 }
  0xa4   : > { %p1820_p10 = por %p1819_p4, %p1818_p0 }
  0xa6   : > { %p1821_p5 = pnand %p1820_p10, %p1814_p13 }
  0xa8   : > { %1824 = shalt.err (!%p1821_p5)
}
  0xa9   : > { %s1825_s26 = scalar_lea.vmem %s2273_s5, 128  ;;  %s1985_s19 = smov [#allocation5]  }
  0xaa   : > { %p1826_p8 = scmp.ne.s32.totalorder %s2273_s5, %s1825_s26  ;;  %s1829_s4 = sshll.u32 %s1985_s19, 4  ;;  %s1830_s4 = int_to_ptr.vmem [resolvable:$false] %s1829_s4 }
  0xab   : > { %s1831_s3 = scalar_lea.vmem %s1830_s4, 256  ;;  %p1832_p1 = scmp.lt.s32.totalorder %s2273_s5, %s1830_s4 }
  0xac   : > { %p1827_p2 = pnand %p1826_p8, %p2795_p3  ;;  %p1833_p6 = scmp.lt.s32.totalorder %s1831_s3, %s1825_s26 }
  0xae   : > { %p1828_p9 = pneg %p1827_p2  ;;  %p1834_p12 = por %p1833_p6, %p1832_p1 }
  0xb0   : > { %p1835_p7 = pnand %p1834_p12, %p1828_p9 }
  0xb2   : > { %1838 = shalt.err (!%p1835_p7)
}
  0xb3   : > { %1564 = dma.hbm_to_vmem [thread:$0]  (%p2795_p3), %s1330_s13, 128, %s2273_s5, %s394_s11  }
  0xb4 PF: > { %p2796_p13 = scmp.ne.s32.totalorder %s2790_s7, 0 }
  0xb5   : > { %s2297_s16 = sand.u32 (!%p2796_p13), 1, %s1952_s17   ;;  %p2797_p11 = scmp.ne.s32.totalorder (!%p2796_p13), %s2780_s25, 0 }
  0xb6   : > { %429 = sbr.rel (%p2796_p13) target bundleno = 1056 (0x420), region = 60  ;;  %s432_s28 = scalar_lea.sflag (!%p2796_p13), [#allocation3], %s2297_s16 }
  0xb7   : > { %s1558_s20 = smul.u32 (!%p2796_p13), 48, %s2297_s16 }
  0xb9   : > { %s2303_s9 = scalar_lea.vmem (!%p2796_p13), [#allocation2], %s1558_s20 }
  0xbd   : > { %1913 = dma.done.wait (%p2797_p11), %s432_s28, 768  }
  0xbe   : > { %1915 = vsyncadd (%p2797_p11), %s432_s28, 4294966528  ;;  %s440_s29 = sand.u32 1, %s2102_s24   ;;  %s442_s7 = sand.u32 1, %s1940_s14  }
  0xbf   : > { %s2311_s5 = sshll.u32 %s442_s7, 3  ;;  %s441_s13 = scalar_lea.sflag [#allocation6], %s440_s29 }
  0xc0   : > { %s444_s11 = scalar_lea.vmem [#allocation5], %s2311_s5  ;;  %p2798_p3 = scmp.ne.s32.totalorder %s2784_s30, 0 }
  0xc2   : > { %1917 = dma.done.wait (%p2798_p3), %s441_s13, 128  }
  0xc3   : > { %1919 = vsyncadd (%p2798_p3), %s441_s13, 4294967168  ;;  %p2799_p0 = scmp.eq.s32.totalorder %s2102_s24, 0 }
  0xc5   : > { %1921 = dma.done.wait (%p2799_p0), [#allocation6], 1024   ;;  %p2800_p4 = pmov %p2799_p0 }
  0xc6   : > { %p2801_p10 = pmov %p2799_p0 }
  0xc7   : > { %1923 = vsyncadd (%p2800_p4), [#allocation6], 4294966272 }
  0xc8   : > { %1925 = dma.done.wait (%p2801_p10), [#allocation9], 1024   ;;  %p2802_p5 = pmov %p2799_p0 }
  0xc9   : > { %v523_v0 = vlaneseq  ;;  %vm551_vm0 = vcmask 1046528   ;;  %vm595_vm1 = vcmask 1045504   ;;  %vm639_vm2 = vcmask 1044480   ;;  %v2328_v9 = vld [vmem:[%s2303_s9] sm:$0xff]  ;;  %v2331_v10 = vld [vmem:[%s2303_s9 + $0x8] sm:$0xff]  ;;  %s2803_s30 = sld [smem:[#allocation27_spill]] }
  0xca   : > { %1927 = vsyncadd (%p2802_p5), [#allocation9], 4294966272  ;;  %vm683_vm3 = vcmask 1043456   ;;  %vm727_vm4 = vcmask 1042432   ;;  %vm771_vm5 = vcmask 1041408   ;;  %v2378_v31 = vld [vmem:[%s2303_s9 + $0x10] sm:$0xff] }
  0xcb   : > { %v524_v1 = vshrl.u32 %v523_v0, 7  ;;  %v2391_v40 = vld [vmem:[%s2303_s9 + $0x18] sm:$0xff]  ;;  %s2804_s8 = sld [smem:[#allocation28_spill]]  ;;  %s2805_s12 = sld [smem:[#allocation18_spill]]  ;;  %vm1987_vm7 = vmmov 0  }
  0xcc   : > { %s2806_s19 = sld [smem:[#allocation25_spill]]  ;;  %s2808_s13 = sld [smem:[#allocation30_spill]] }
  0xcd   : > { %v525_v2 = vsub.s32 0, %v524_v1  ;;  %v535_v3 = vsub.s32 1, %v524_v1  ;;  %v579_v4 = vsub.s32 2, %v524_v1  ;;  %v623_v5 = vsub.s32 3, %v524_v1  ;;  %s2809_s25 = sld [smem:[#allocation32_spill]]  ;;  %s2810_s2 = sld [smem:[#allocation17_spill]] }
  0xce   : > { %v667_v6 = vsub.s32 4, %v524_v1  ;;  %v711_v7 = vsub.s32 5, %v524_v1  ;;  %v755_v8 = vsub.s32 6, %v524_v1  ;;  %s2811_s10 = sld [smem:[#allocation23_spill]]  ;;  %s1268_s28 = scalar_lea.sflag [#allocation4], %s2297_s16 }
  0xcf   : > { %v522_v11 = vld [vmem:[%s2803_s30] sm:$0x7f]  ;;  %s2649_s30 = scalar_lea.vmem [#allocation10], %s1558_s20 }
  0xd0   : > { %v2336_v12 = vrot.slane %v522_v11, %v525_v2  ;;  %v2338_v13 = vrot.slane %v522_v11, %v535_v3  ;;  %v2340_v14 = vrot.slane %v522_v11, %v579_v4  ;;  %v2342_v15 = vrot.slane %v522_v11, %v623_v5 }
  0xd1   : > { %v2344_v16 = vrot.slane %v522_v11, %v667_v6  ;;  %v2346_v17 = vrot.slane %v522_v11, %v711_v7  ;;  %v2348_v18 = vrot.slane %v522_v11, %v755_v8  ;;  %v2441_v6 = vld [vmem:[%s2804_s8] ss:$0 sm:$0xff]  ;;  %p507_p8 = scmp.lt.s32.totalorder %s2805_s12, 1  ;;  %s1559_s6 = smul.u32 18, %s2805_s12 }
  0xd2   : > { %v527_v19 = vmul.f32 %v2336_v12, %v2328_v9  ;;  %v537_v20 = vmul.f32 %v2338_v13, %v2328_v9  ;;  %v2356_v21 = vmul.f32 %v2338_v13, %v2331_v10  ;;  %v581_v22 = vmul.f32 %v2340_v14, %v2328_v9 }
  0xd3   : > { %v2362_v23 = vmul.f32 %v2340_v14, %v2331_v10  ;;  %v625_v24 = vmul.f32 %v2342_v15, %v2328_v9  ;;  %v2368_v25 = vmul.f32 %v2342_v15, %v2331_v10  ;;  %v669_v26 = vmul.f32 %v2344_v16, %v2328_v9  ;;  %s508_s27 = scalar_select %p507_p8, %s2805_s12, 1 }
  0xd4   : > { %v552_v27 = vrot.slane %v537_v20, 1  ;;  %v553_v28 = vrot.slane %v2356_v21, 1  ;;  %v596_v29 = vrot.slane %v581_v22, 2  ;;  %v2375_v30 = vmul.f32 %v2344_v16, %v2331_v10  ;;  %s1275_s20 = smul.u32 6, %s2810_s2  ;;  %p2813_p9 = scmp.ne.s32.totalorder %s2811_s10, 0 }
  0xd5   : > { %v597_v32 = vrot.slane %v2362_v23, 2  ;;  %v640_v33 = vrot.slane %v625_v24, 3  ;;  %v641_v34 = vrot.slane %v2368_v25, 3  ;;  %v684_v35 = vrot.slane %v669_v26, 4  ;;  %s509_s4 = scalar_lea.vmem %s2806_s19, %s508_s27 }
  0xd6   : > { %v554_v36 = vsel %vm551_vm0, %v552_v27, %v553_v28  ;;  %v685_v37 = vrot.slane %v2375_v30, 4  ;;  %v713_v38 = vmul.f32 %v2346_v17, %v2328_v9  ;;  %v2388_v39 = vmul.f32 %v2346_v17, %v2331_v10  ;;  %s1280_s8 = sadd.s32 %s1559_s6, %s1275_s20 }
  0xd7   : > { %v571_v41 = vadd.f32 %v554_v36, %v527_v19  ;;  %v598_v42 = vsel %vm595_vm1, %v596_v29, %v597_v32  ;;  %v642_v43 = vsel %vm639_vm2, %v640_v33, %v641_v34  ;;  %v757_v44 = vmul.f32 %v2348_v18, %v2328_v9  ;;  %s1475_s26 = sshll.u32 %s1280_s8, 7 }
  0xd8   : > { %v686_v45 = vsel %vm683_vm3, %v684_v35, %v685_v37  ;;  %v728_v46 = vrot.slane %v713_v38, 5  ;;  %v729_v47 = vrot.slane %v2388_v39, 5  ;;  %v2407_v48 = vmul.f32 %v2348_v18, %v2331_v10 }
  0xd9   : > { %v615_v49 = vadd.f32 %v598_v42, %v571_v41  ;;  %v772_v50 = vrot.slane %v757_v44, 6  ;;  %v529_v51 = vmul.f32 %v2336_v12, %v2378_v31  ;;  %v539_v52 = vmul.f32 %v2338_v13, %v2378_v31 }
  0xda   : > { %v730_v53 = vsel %vm727_vm4, %v728_v46, %v729_v47  ;;  %v773_v54 = vrot.slane %v2407_v48, 6  ;;  %v2417_v55 = vmul.f32 %v2338_v13, %v2391_v40  ;;  %v583_v56 = vmul.f32 %v2340_v14, %v2378_v31 }
  0xdb   : > { %v659_v57 = vadd.f32 %v642_v43, %v615_v49  ;;  %v555_v58 = vrot.slane %v539_v52, 1  ;;  %v2423_v59 = vmul.f32 %v2340_v14, %v2391_v40  ;;  %v627_v60 = vmul.f32 %v2342_v15, %v2378_v31 }
  0xdc   : > { %v774_v61 = vsel %vm771_vm5, %v772_v50, %v773_v54  ;;  %v557_v62 = vrot.slane %v2417_v55, 1  ;;  %v599_v63 = vrot.slane %v583_v56, 2  ;;  %v2433_v1 = vmul.f32 %v2342_v15, %v2391_v40 }
  0xdd   : > { %v703_v2 = vadd.f32 %v686_v45, %v659_v57  ;;  %v601_v3 = vrot.slane %v2423_v59, 2  ;;  %v643_v4 = vrot.slane %v627_v60, 3  ;;  %v671_v5 = vmul.f32 %v2344_v16, %v2378_v31 }
  0xde   : > { %v558_v7 = vsel %vm551_vm0, %v555_v58, %v557_v62  ;;  %v645_v8 = vrot.slane %v2433_v1, 3  ;;  %v672_v11 = vmul.f32 %v2344_v16, %v2391_v40  ;;  %v715_v19 = vmul.f32 %v2346_v17, %v2378_v31 }
  0xdf   : > { %v747_v20 = vadd.f32 %v730_v53, %v703_v2  ;;  %v573_v21 = vadd.f32 %v558_v7, %v529_v51  ;;  %v602_v22 = vsel %vm595_vm1, %v599_v63, %v601_v3  ;;  %v687_v24 = vrot.slane %v671_v5, 4  ;;  %v2471_v51 = vld [vmem:[%s2303_s9 + $0x20] sm:$0xff] }
  0xe0   : > { %v646_v26 = vsel %vm639_vm2, %v643_v4, %v645_v8  ;;  %v689_v27 = vrot.slane %v672_v11, 4  ;;  %v2453_v29 = vmul.f32 %v2346_v17, %v2391_v40  ;;  %v731_v33 = vrot.slane %v715_v19, 5 }
  0xe1   : > { %v791_v35 = vadd.f32 %v774_v61, %v747_v20  ;;  %v617_v36 = vadd.f32 %v602_v22, %v573_v21  ;;  %v759_v38 = vmul.f32 %v2348_v18, %v2378_v31  ;;  %v2459_v39 = vmul.f32 %v2348_v18, %v2391_v40  ;;  %v2507_v21 = vld [vmem:[%s2303_s9 + $0x28] sm:$0xff]  ;;  %s2807_s9 = sld [smem:[#allocation26_spill]] }
  0xe2   : > { %v690_v41 = vsel %vm683_vm3, %v687_v24, %v689_v27  ;;  %v733_v42 = vrot.slane %v2453_v29, 5  ;;  %v528_v43 = vmul.f32 %v2336_v12, %v2331_v10  ;;  %v556_v44 = vsel %vm551_vm0, %v553_v28, %v555_v58 }
  0xe3   : > { %v2467_v45 = vadd.f32 %v2441_v6, %v791_v35  ;;  %v661_v46 = vadd.f32 %v646_v26, %v617_v36  ;;  %v775_v49 = vrot.slane %v759_v38, 6  ;;  %v777_v50 = vrot.slane %v2459_v39, 6 }
  0xe4   : > { %v734_v52 = vsel %vm727_vm4, %v731_v33, %v733_v42  ;;  %v572_v53 = vadd.f32 %v556_v44, %v528_v43  ;;  %v600_v55 = vsel %vm595_vm1, %v597_v32, %v599_v63  ;;  %v644_v57 = vsel %vm639_vm2, %v641_v34, %v643_v4 }
  0xe5   : > { %810 = vadd.xlane.f32.xlu0 %v2467_v45  ;;  %v705_v56 = vadd.f32 %v690_v41, %v661_v46  ;;  %v778_v28 = vsel %vm771_vm5, %v775_v49, %v777_v50  ;;  %v688_v58 = vsel %vm683_vm3, %v685_v37, %v687_v24  ;;  %v732_v60 = vsel %vm727_vm4, %v729_v47, %v731_v33 }
  0xe6   : > { %v616_v59 = vadd.f32 %v600_v55, %v572_v53  ;;  %v530_v23 = vmul.f32 %v2336_v12, %v2391_v40  ;;  %v541_v32 = vmul.f32 %v2338_v13, %v2471_v51  ;;  %v585_v25 = vmul.f32 %v2340_v14, %v2471_v51 }
  0xe7   : > { %v749_v61 = vadd.f32 %v734_v52, %v705_v56  ;;  %v629_v34 = vmul.f32 %v2342_v15, %v2471_v51  ;;  %v673_v30 = vmul.f32 %v2344_v16, %v2471_v51  ;;  %v717_v47 = vmul.f32 %v2346_v17, %v2471_v51  ;;  %v2537_v56 = vld [vmem:[%s444_s11] sm:$0xff]  ;;  %s512_s29 = scalar_lea.vmem %s2807_s9, %s508_s27  ;;  %s1283_s27 = sshll.u32 %s2649_s30, 4  ;;  %s2665_s27 = int_to_ptr.vmem [resolvable:$true] %s1283_s27 }
  0xe8   : > { %v660_v37 = vadd.f32 %v644_v57, %v616_v59  ;;  %v559_v63 = vrot.slane %v541_v32, 1  ;;  %v2500_v1 = vmul.f32 %v2348_v18, %v2471_v51  ;;  %v603_v4 = vrot.slane %v585_v25, 2  ;;  %s1840_s9 = scalar_lea.vmem %s2665_s27, 768 }
  0xe9   : > { %v793_v2 = vadd.f32 %v778_v28, %v749_v61  ;;  %v647_v5 = vrot.slane %v629_v34, 3  ;;  %v691_v7 = vrot.slane %v673_v30, 4  ;;  %v776_v19 = vsel %vm771_vm5, %v773_v54, %v775_v49  ;;  %p1841_p2 = scmp.ne.s32.totalorder %s2665_s27, %s1840_s9 }
  0xea   : > { %v704_v11 = vadd.f32 %v688_v58, %v660_v37  ;;  %v560_v20 = vsel %vm551_vm0, %v557_v62, %v559_v63  ;;  %v604_v26 = vsel %vm595_vm1, %v601_v3, %v603_v4  ;;  %v735_v29 = vrot.slane %v717_v47, 5 }
  0xeb   : > { %v2510_v22 = vadd.f32 %v2441_v6, %v793_v2  ;;  %v574_v24 = vadd.f32 %v560_v20, %v530_v23  ;;  %v648_v35 = vsel %vm639_vm2, %v645_v8, %v647_v5  ;;  %v692_v36 = vsel %vm683_vm3, %v689_v27, %v691_v7  ;;  %p1842_p1 = pnand %p1841_p2, %p2813_p9 }
  0xec   : > { %v748_v33 = vadd.f32 %v732_v60, %v704_v11  ;;  %v779_v48 = vrot.slane %v2500_v1, 6  ;;  %v531_v62 = vmul.f32 %v2336_v12, %v2471_v51  ;;  %v542_v38 = vmul.f32 %v2338_v13, %v2507_v21 }
  0xed   : > { %814 = vadd.xlane.f32.xlu1 %v2510_v22  ;;  %v618_v54 = vadd.f32 %v604_v26, %v574_v24  ;;  %v586_v3 = vmul.f32 %v2340_v14, %v2507_v21  ;;  %v630_v8 = vmul.f32 %v2342_v15, %v2507_v21  ;;  %v674_v27 = vmul.f32 %v2344_v16, %v2507_v21  ;;  %p1843_p6 = pneg %p1842_p1 }
  0xee   : > { %v792_v39 = vadd.f32 %v776_v19, %v748_v33  ;;  %v718_v41 = vmul.f32 %v2346_v17, %v2507_v21  ;;  %v561_v44 = vrot.slane %v542_v38, 1  ;;  %v762_v49 = vmul.f32 %v2348_v18, %v2507_v21 }
  0xef   : > { %v662_v43 = vadd.f32 %v648_v35, %v618_v54  ;;  %v605_v46 = vrot.slane %v586_v3, 2  ;;  %v736_v53 = vsel %vm727_vm4, %v733_v42, %v735_v29  ;;  %v649_v55 = vrot.slane %v630_v8, 3 }
  0xf0   : > { %v2532_v52 = vadd.f32 %v2441_v6, %v792_v39  ;;  %v562_v57 = vsel %vm551_vm0, %v559_v63, %v561_v44  ;;  %v693_v59 = vrot.slane %v674_v27, 4  ;;  %v780_v60 = vsel %vm771_vm5, %v777_v50, %v779_v48 }
  0xf1   : > { %v706_v28 = vadd.f32 %v692_v36, %v662_v43  ;;  %v606_v58 = vsel %vm595_vm1, %v603_v4, %v605_v46  ;;  %v575_v23 = vadd.f32 %v562_v57, %v531_v62  ;;  %v737_v32 = vrot.slane %v718_v41, 5 }
  0xf2   : > { %812 = vadd.xlane.f32.xlu0 %v2532_v52  ;;  %v781_v61 = vrot.slane %v762_v49, 6  ;;  %v650_v42 = vsel %vm639_vm2, %v647_v5, %v649_v55  ;;  %v532_v34 = vmul.f32 %v2336_v12, %v2507_v21  ;;  %v543_v30 = vmul.f32 %v2338_v13, %v2537_v56 }
  0xf3   : > { %v750_v25 = vadd.f32 %v736_v53, %v706_v28  ;;  %v619_v37 = vadd.f32 %v606_v58, %v575_v23  ;;  %v587_v63 = vmul.f32 %v2340_v14, %v2537_v56  ;;  %v631_v47 = vmul.f32 %v2342_v15, %v2537_v56 }
  0xf4   : > { %v675_v50 = vmul.f32 %v2344_v16, %v2537_v56  ;;  %v694_v2 = vsel %vm683_vm3, %v691_v7, %v693_v59  ;;  %v563_v4 = vrot.slane %v543_v30, 1  ;;  %v719_v12 = vmul.f32 %v2346_v17, %v2537_v56 }
  0xf5   : > { %v794_v1 = vadd.f32 %v780_v60, %v750_v25  ;;  %v663_v5 = vadd.f32 %v650_v42, %v619_v37  ;;  %v738_v13 = vsel %vm727_vm4, %v735_v29, %v737_v32  ;;  %v607_v11 = vrot.slane %v587_v63, 2 }
  0xf6   : > { %v651_v19 = vrot.slane %v631_v47, 3  ;;  %v564_v20 = vsel %vm551_vm0, %v561_v44, %v563_v4  ;;  %v695_v15 = vrot.slane %v675_v50, 4  ;;  %v763_v16 = vmul.f32 %v2348_v18, %v2537_v56  ;;  %v1687_v44 = vld [vmem:[#allocation7] sm:$0xff]   ;;  %v1688_v47 = vld [vmem:[#allocation7 + $0x8] sm:$0xff]  }
  0xf7   : > { %v807_v14 = vadd.f32 %v2441_v6, %v794_v1  ;;  %v707_v24 = vadd.f32 %v694_v2, %v663_v5  ;;  %v576_v26 = vadd.f32 %v564_v20, %v532_v34  ;;  %v608_v7 = vsel %vm595_vm1, %v605_v46, %v607_v11  ;;  %v1690_v20 = vld [vmem:[#allocation7 + $0x18] sm:$0xff]  }
  0xf8   : > { %v782_v17 = vsel %vm771_vm5, %v779_v48, %v781_v61  ;;  %v652_v33 = vsel %vm639_vm2, %v649_v55, %v651_v19  ;;  %v739_v29 = vrot.slane %v719_v12, 5  ;;  %v696_v54 = vsel %vm683_vm3, %v693_v59, %v695_v15  ;;  %v1691_v15 = vld [vmem:[#allocation7 + $0x20] sm:$0xff]  }
  0xf9   : > { %816 = vadd.xlane.f32.xlu1 %v807_v14  ;;  %v751_v35 = vadd.f32 %v738_v13, %v707_v24  ;;  %v620_v36 = vadd.f32 %v608_v7, %v576_v26  ;;  %v783_v62 = vrot.slane %v763_v16, 6  ;;  %v1986_v46 = vmov 0.0   ;;  %v1692_v16 = vld [vmem:[#allocation7 + $0x28] sm:$0xff]   ;;  %v1693_v24 = vld [vmem:[#allocation7 + $0x30] sm:$0xff]   ;;  %v1694_v26 = vld [vmem:[#allocation7 + $0x38] sm:$0xff]  }
  0xfa   : > { %v740_v39 = vsel %vm727_vm4, %v737_v32, %v739_v29  ;;  %1500 = vmatprep.subr.bf16.mxu0 %v1986_v46  ;;  %1528 = vmatprep.subr.bf16.mxu1 %v1986_v46  ;;  %v835_v49 = vand.u32 127, %v523_v0 }
  0xfb   : > { %v795_v38 = vadd.f32 %v782_v17, %v751_v35  ;;  %v664_v3 = vadd.f32 %v652_v33, %v620_v36  ;;  %v784_v27 = vsel %vm771_vm5, %v781_v61, %v783_v62  ;;  %1501 = vmatpush3.bf16.msra.mxu0 %v1687_v44  ;;  %1516 = vmatprep.mubr.msk.bf16.mxu0 %vm1987_vm7, %v1986_v46 }
  0xfc   : > { %1502 = vmatprep.subr.bf16.mxu0 %v1986_v46  ;;  %vm836_vm6 = vcmp.lt.s32.totalorder %v835_v49, 64  ;;  %1544 = vmatprep.mubr.msk.bf16.mxu1 %vm1987_vm7, %v1986_v46 }
  0xfd   : > { %v808_v18 = vadd.f32 %v2441_v6, %v795_v38  ;;  %v708_v8 = vadd.f32 %v696_v54, %v664_v3 }
  0xff   : > { %818 = vadd.xlane.f32.xlu0 %v808_v18  ;;  %v752_v41 = vadd.f32 %v740_v39, %v708_v8  ;;  %1503 = vmatpush3.bf16.msra.mxu0 %v1688_v47 }
 0x100   : > { %1504 = vmatprep.subr.bf16.mxu0 %v1986_v46 }
 0x101   : > { %v796_v48 = vadd.f32 %v784_v27, %v752_v41  ;;  %v1455_v41 = vld [vmem:[%s509_s4] ss:$0 sm:$0xff]  ;;  %s2812_s4 = sld [smem:[#allocation33_spill]] }
 0x103   : > { %v809_v43 = vadd.f32 %v2441_v6, %v796_v48 }
 0x105   : > { %820 = vadd.xlane.f32.xlu1 %v809_v43 }
 0x107   : > { %s2675_s3 = scalar_lea.hbm %s2812_s4, %s1475_s26 }
 0x172   : > { %v811_v53 = vpop.xlane.xlu0 %810 }
 0x173   : > { %v822_v55 = vmul.f32 0.015625, %v811_v53 }
 0x175   : > { %v2575_v28 = vsub.f32 %v2467_v45, %v822_v55 }
 0x177   : > { %v839_v6 = vsel %vm836_vm6, %v2575_v28, 0.0 }
 0x178   : > { %v845_v57 = vmul.f32 %v839_v6, %v839_v6 }
 0x17a   : > { %v815_v58 = vpop.xlane.xlu1 %814  ;;  %851 = vadd.xlane.f32.xlu0 %v845_v57  ;;  %v1456_v57 = vld [vmem:[%s512_s29] ss:$0 sm:$0xff]  ;;  %s1988_s29 = smov [#allocation10]  }
 0x17b   : > { %v824_v59 = vmul.f32 0.015625, %v815_v58  ;;  %s1844_s7 = sshll.u32 %s1988_s29, 4  ;;  %s1845_s7 = int_to_ptr.vmem [resolvable:$false] %s1844_s7 }
 0x17c   : > { %s1846_s5 = scalar_lea.vmem %s1845_s7, 1536  ;;  %p1847_p12 = scmp.lt.s32.totalorder %s2665_s27, %s1845_s7 }
 0x17d   : > { %v2580_v60 = vsub.f32 %v2510_v22, %v824_v59  ;;  %p1848_p7 = scmp.lt.s32.totalorder %s1846_s5, %s1840_s9 }
 0x17f   : > { %v813_v23 = vpop.xlane.xlu0 %812  ;;  %v841_v0 = vsel %vm836_vm6, %v2580_v60, 0.0  ;;  %p1849_p13 = por %p1848_p7, %p1847_p12 }
 0x180   : > { %v823_v32 = vmul.f32 0.015625, %v813_v23  ;;  %v847_v61 = vmul.f32 %v841_v0, %v841_v0 }
 0x181   : > { %p1850_p11 = pnand %p1849_p13, %p1843_p6 }
 0x182   : > { %v2585_v25 = vsub.f32 %v2532_v52, %v823_v32  ;;  %855 = vadd.xlane.f32.xlu0 %v847_v61 }
 0x184   : > { %v840_v45 = vsel %vm836_vm6, %v2585_v25, 0.0 }
 0x185   : > { %v846_v42 = vmul.f32 %v840_v45, %v840_v45 }
 0x186   : > { %v817_v34 = vpop.xlane.xlu1 %816 }
 0x187   : > { %v825_v30 = vmul.f32 0.015625, %v817_v34  ;;  %853 = vadd.xlane.f32.xlu1 %v846_v42 }
 0x189   : > { %v2589_v37 = vsub.f32 %v807_v14, %v825_v30  ;;  %v1689_v14 = vld [vmem:[#allocation7 + $0x10] sm:$0xff]  }
 0x18a   : > { %1505 = vmatpush3.bf16.msra.mxu0 %v1689_v14  ;;  %v1696_v14 = vld [vmem:[#allocation8 + $0x8] sm:$0xff]  }
 0x18b   : > { %v842_v22 = vsel %vm836_vm6, %v2589_v37, 0.0  ;;  %1506 = vmatprep.subr.bf16.mxu0 %v1986_v46 }
 0x18c   : > { %v848_v63 = vmul.f32 %v842_v22, %v842_v22  ;;  %v819_v50 = vpop.xlane.xlu0 %818 }
 0x18d   : > { %v826_v1 = vmul.f32 0.015625, %v819_v50 }
 0x18e   : > { %857 = vadd.xlane.f32.xlu1 %v848_v63  ;;  %1507 = vmatpush3.bf16.msra.mxu0 %v1690_v20  ;;  %v1698_v20 = vld [vmem:[#allocation8 + $0x18] sm:$0xff]  }
 0x18f   : > { %v2594_v52 = vsub.f32 %v808_v18, %v826_v1  ;;  %1508 = vmatprep.subr.bf16.mxu0 %v1986_v46 }
 0x191   : > { %v843_v2 = vsel %vm836_vm6, %v2594_v52, 0.0 }
 0x192   : > { %v821_v4 = vpop.xlane.xlu1 %820  ;;  %v849_v12 = vmul.f32 %v843_v2, %v843_v2  ;;  %1509 = vmatpush3.bf16.msra.mxu0 %v1691_v15  ;;  %v1700_v15 = vld [vmem:[#allocation8 + $0x28] sm:$0xff]  }
 0x193   : > { %v827_v5 = vmul.f32 0.015625, %v821_v4  ;;  %1510 = vmatprep.subr.bf16.mxu0 %v1986_v46 }
 0x194   : > { %859 = vadd.xlane.f32.xlu0 %v849_v12 }
 0x195   : > { %v2598_v13 = vsub.f32 %v809_v43, %v827_v5 }
 0x196   : > { %1511 = vmatpush3.bf16.msra.mxu0 %v1692_v16  ;;  %v1701_v16 = vld [vmem:[#allocation8 + $0x30] sm:$0xff]  }
 0x197   : > { %v844_v11 = vsel %vm836_vm6, %v2598_v13, 0.0  ;;  %1512 = vmatprep.subr.bf16.mxu0 %v1986_v46 }
 0x198   : > { %v850_v19 = vmul.f32 %v844_v11, %v844_v11 }
 0x19a   : > { %861 = vadd.xlane.f32.xlu1 %v850_v19  ;;  %1513 = vmatpush3.bf16.msra.mxu0 %v1693_v24  ;;  %v1695_v19 = vld [vmem:[#allocation8] sm:$0xff]   ;;  %v1702_v24 = vld [vmem:[#allocation8 + $0x38] sm:$0xff]  }
 0x19b   : > { %1514 = vmatprep.subr.bf16.mxu0 %v1986_v46  ;;  %1529 = vmatpush3.bf16.msra.mxu1 %v1695_v19 }
 0x19c   : > { %1530 = vmatprep.subr.bf16.mxu1 %v1986_v46 }
 0x19e   : > { %1515 = vmatpush3.bf16.msra.mxu0 %v1694_v26  ;;  %v1457_v26 = vld [vmem:[%s2808_s13] ss:$0 sm:$0xff] }
 0x19f   : > { %1531 = vmatpush3.bf16.msra.mxu1 %v1696_v14 }
 0x1a0   : > { %1532 = vmatprep.subr.bf16.mxu1 %v1986_v46 }
 0x207   : > { %v852_v7 = vpop.xlane.xlu0 %851 }
 0x208   : > { %v863_v17 = vmul.f32 0.015625, %v852_v7 }
 0x20a   : > { %v869_v33 = vadd.f32 1e-06, %v863_v17 }
 0x20c   : > { %1703 = vrsqrt.f32 %v869_v33 }
 0x20f   : > { %v856_v29 = vpop.xlane.xlu0 %855 }
 0x210   : > { %v865_v35 = vmul.f32 0.015625, %v856_v29 }
 0x212   : > { %v871_v38 = vadd.f32 1e-06, %v865_v35 }
 0x214   : > { %v854_v36 = vpop.xlane.xlu1 %853 }
 0x215   : > { %v864_v54 = vmul.f32 0.015625, %v854_v36 }
 0x216   : > { %v1704_v18 = vpop.eup %1703 }
 0x217   : > { %v870_v62 = vadd.f32 1e-06, %v864_v54  ;;  %v881_v27 = vmul.f32 %v1704_v18, %v2575_v28 }
 0x219   : > { %1705 = vrsqrt.f32 %v870_v62  ;;  %v894_v53 = vmul.f32 %v1455_v41, %v881_v27 }
 0x21a   : > { %1707 = vrsqrt.f32 %v871_v38 }
 0x21b   : > { %v858_v3 = vpop.xlane.xlu1 %857  ;;  %v907_v23 = vadd.f32 %v1456_v57, %v894_v53 }
 0x21c   : > { %v866_v39 = vmul.f32 0.015625, %v858_v3 }
 0x21e   : > { %v872_v8 = vadd.f32 1e-06, %v866_v39 }
 0x220   : > { %1709 = vrsqrt.f32 %v872_v8 }
 0x221   : > { %v860_v48 = vpop.xlane.xlu0 %859 }
 0x222   : > { %v867_v44 = vmul.f32 0.015625, %v860_v48 }
 0x223   : > { %v1706_v43 = vpop.eup %1705 }
 0x224   : > { %v882_v49 = vmul.f32 %v1706_v43, %v2585_v25  ;;  %v1708_v55 = vpop.eup %1707  ;;  %v873_v6 = vadd.f32 1e-06, %v867_v44 }
 0x225   : > { %v883_v28 = vmul.f32 %v1708_v55, %v2580_v60 }
 0x226   : > { %v895_v58 = vmul.f32 %v1455_v41, %v882_v49  ;;  %1711 = vrsqrt.f32 %v873_v6 }
 0x227   : > { %v862_v59 = vpop.xlane.xlu1 %861  ;;  %v896_v30 = vmul.f32 %v1455_v41, %v883_v28 }
 0x228   : > { %v908_v0 = vadd.f32 %v1456_v57, %v895_v58  ;;  %v868_v32 = vmul.f32 0.015625, %v862_v59 }
 0x229   : > { %v909_v63 = vadd.f32 %v1456_v57, %v896_v30 }
 0x22a   : > { %v1710_v61 = vpop.eup %1709  ;;  %v913_v45 = vpack.c.bf16 %v908_v0, %v907_v23  ;;  %v874_v42 = vadd.f32 1e-06, %v868_v32 }
 0x22b   : > { %v884_v34 = vmul.f32 %v1710_v61, %v2589_v37 }
 0x22c   : > { %1517 = vmatmul.mubr.bf16.vlgmr.msra.gmra.mrb[0].mxu0 %v913_v45  ;;  %1713 = vrsqrt.f32 %v874_v42 }
 0x22d   : > { %1520 = vmatprep.mubr.msk.bf16.mxu0 %vm1987_vm7, %v1986_v46  ;;  %v897_v25 = vmul.f32 %v1455_v41, %v884_v34 }
 0x22f   : > { %v910_v22 = vadd.f32 %v1456_v57, %v897_v25 }
 0x230   : > { %v1712_v47 = vpop.eup %1711 }
 0x231   : > { %v914_v50 = vpack.c.bf16 %v910_v22, %v909_v63  ;;  %v885_v60 = vmul.f32 %v1712_v47, %v2594_v52  ;;  %v1697_v52 = vld [vmem:[#allocation8 + $0x10] sm:$0xff]  }
 0x232   : > { %1533 = vmatpush3.bf16.msra.mxu1 %v1697_v52 }
 0x233   : > { %v898_v2 = vmul.f32 %v1455_v41, %v885_v60  ;;  %1534 = vmatprep.subr.bf16.mxu1 %v1986_v46 }
 0x234   : > { %1521 = vmatmul.mubr.bf16.gmra.mrb[4].mxu0 %v914_v50 }
 0x235   : > { %1524 = vmatprep.mubr.msk.bf16.mxu0 %vm1987_vm7, %v1986_v46  ;;  %v911_v12 = vadd.f32 %v1456_v57, %v898_v2 }
 0x236   : > { %v1714_v1 = vpop.eup %1713  ;;  %1535 = vmatpush3.bf16.msra.mxu1 %v1698_v20 }
 0x237   : > { %v886_v37 = vmul.f32 %v1714_v1, %v2598_v13  ;;  %1536 = vmatprep.subr.bf16.mxu1 %v1986_v46  ;;  %v1699_v13 = vld [vmem:[#allocation8 + $0x20] sm:$0xff]  }
 0x239   : > { %v899_v4 = vmul.f32 %v1455_v41, %v886_v37 }
 0x23a   : > { %1537 = vmatpush3.bf16.msra.mxu1 %v1699_v13 }
 0x23b   : > { %v912_v5 = vadd.f32 %v1456_v57, %v899_v4  ;;  %1538 = vmatprep.subr.bf16.mxu1 %v1986_v46 }
 0x23d   : > { %v915_v11 = vpack.c.bf16 %v912_v5, %v911_v12 }
 0x23e   : > { %1539 = vmatpush3.bf16.msra.mxu1 %v1700_v15 }
 0x23f   : > { %1525 = vmatmul.mubr.bf16.gmra.mrb[8].mxu0 %v915_v11  ;;  %1540 = vmatprep.subr.bf16.mxu1 %v1986_v46 }
 0x242   : > { %1541 = vmatpush3.bf16.msra.mxu1 %v1701_v16 }
 0x243   : > { %1542 = vmatprep.subr.bf16.mxu1 %v1986_v46 }
 0x246   : > { %1543 = vmatpush3.bf16.msra.mxu1 %v1702_v24 }
 0x2ff   : > { %v1021_v7 = vpop.f32.mrb[0].mxu0 }
 0x300   : > { %v1022_v17 = vadd.f32 %v1457_v26, %v1021_v7  ;;  %v1518_v33 = vpop.f32.mrb[1].mxu0 }
 0x301   : > { %v1024_v29 = vpop.f32.mrb[2].mxu0 }
 0x302   : > { %v1044_v35 = vmul.f32 %v1022_v17, %v1022_v17  ;;  %v1025_v36 = vadd.f32 %v1457_v26, %v1024_v29  ;;  %v1519_v54 = vpop.f32.mrb[3].mxu0 }
 0x304   : > { %v1050_v62 = vmul.f32 %v1044_v35, %v1022_v17  ;;  %v1045_v38 = vmul.f32 %v1025_v36, %v1025_v36 }
 0x306   : > { %v1056_v3 = vmul.f32 0.044715, %v1050_v62  ;;  %v1051_v39 = vmul.f32 %v1045_v38, %v1025_v36 }
 0x307   : > { %v1029_v18 = vpop.f32.mrb[4].mxu0 }
 0x308   : > { %v1062_v8 = vadd.f32 %v1056_v3, %v1022_v17  ;;  %v1057_v27 = vmul.f32 0.044715, %v1051_v39  ;;  %v1030_v41 = vadd.f32 %v1457_v26, %v1029_v18  ;;  %v1522_v48 = vpop.f32.mrb[5].mxu0 }
 0x309   : > { %v1032_v43 = vpop.f32.mrb[6].mxu0 }
 0x30a   : > { %v1068_v44 = vmul.f32 0.7978846, %v1062_v8  ;;  %v1063_v49 = vadd.f32 %v1057_v27, %v1025_v36  ;;  %v1046_v53 = vmul.f32 %v1030_v41, %v1030_v41  ;;  %v1033_v55 = vadd.f32 %v1457_v26, %v1032_v43  ;;  %v1523_v6 = vpop.f32.mrb[7].mxu0 }
 0x30c   : > { %1715 = vtanh.f32 %v1068_v44  ;;  %v1069_v57 = vmul.f32 0.7978846, %v1063_v49  ;;  %v1052_v58 = vmul.f32 %v1046_v53, %v1030_v41  ;;  %v1047_v59 = vmul.f32 %v1033_v55, %v1033_v55 }
 0x30e   : > { %1717 = vtanh.f32 %v1069_v57  ;;  %v1058_v23 = vmul.f32 0.044715, %v1052_v58  ;;  %v1053_v0 = vmul.f32 %v1047_v59, %v1033_v55 }
 0x310   : > { %v1064_v28 = vadd.f32 %v1058_v23, %v1030_v41  ;;  %v1059_v32 = vmul.f32 0.044715, %v1053_v0 }
 0x312   : > { %v1070_v61 = vmul.f32 0.7978846, %v1064_v28  ;;  %v1065_v45 = vadd.f32 %v1059_v32, %v1033_v55  ;;  %v1037_v42 = vpop.f32.mrb[8].mxu0 }
 0x313   : > { %v1038_v30 = vadd.f32 %v1457_v26, %v1037_v42  ;;  %v1526_v25 = vpop.f32.mrb[9].mxu0 }
 0x314   : > { %1719 = vtanh.f32 %v1070_v61  ;;  %v1071_v34 = vmul.f32 0.7978846, %v1065_v45  ;;  %v1040_v22 = vpop.f32.mrb[10].mxu0 }
 0x315   : > { %v1048_v47 = vmul.f32 %v1038_v30, %v1038_v30  ;;  %v1041_v50 = vadd.f32 %v1457_v26, %v1040_v22  ;;  %v1527_v60 = vpop.f32.mrb[11].mxu0 }
 0x316   : > { %v1716_v63 = vpop.eup %1715  ;;  %1721 = vtanh.f32 %v1071_v34 }
 0x317   : > { %v1080_v1 = vadd.f32 1.0, %v1716_v63  ;;  %v1054_v2 = vmul.f32 %v1048_v47, %v1038_v30  ;;  %v1049_v4 = vmul.f32 %v1041_v50, %v1041_v50 }
 0x318   : > { %v1718_v37 = vpop.eup %1717 }
 0x319   : > { %v1081_v12 = vadd.f32 1.0, %v1718_v37  ;;  %v1086_v5 = vmul.f32 0.5, %v1080_v1  ;;  %v1060_v11 = vmul.f32 0.044715, %v1054_v2  ;;  %v1055_v19 = vmul.f32 %v1049_v4, %v1041_v50 }
 0x31b   : > { %v1087_v14 = vmul.f32 0.5, %v1081_v12  ;;  %v1066_v52 = vadd.f32 %v1060_v11, %v1038_v30  ;;  %v1061_v20 = vmul.f32 0.044715, %v1055_v19  ;;  %v1092_v13 = vmul.f32 %v1086_v5, %v1022_v17 }
 0x31d   : > { %v1093_v15 = vmul.f32 %v1087_v14, %v1025_v36  ;;  %v1072_v24 = vmul.f32 0.7978846, %v1066_v52  ;;  %v1067_v7 = vadd.f32 %v1061_v20, %v1041_v50 }
 0x31e   : > { %v1720_v16 = vpop.eup %1719 }
 0x31f   : > { %v1098_v33 = vpack.c.bf16 %v1093_v15, %v1092_v13  ;;  %v1082_v29 = vadd.f32 1.0, %v1720_v16  ;;  %1723 = vtanh.f32 %v1072_v24  ;;  %v1073_v35 = vmul.f32 0.7978846, %v1067_v7 }
 0x320   : > { %v1722_v26 = vpop.eup %1721 }
 0x321   : > { %1545 = vmatmul.mubr.bf16.vlgmr.msra.gmra.mrb[0].mxu1 %v1098_v33  ;;  %v1083_v54 = vadd.f32 1.0, %v1722_v26  ;;  %v1088_v62 = vmul.f32 0.5, %v1082_v29  ;;  %1725 = vtanh.f32 %v1073_v35 }
 0x322   : > { %1548 = vmatprep.mubr.msk.bf16.mxu1 %vm1987_vm7, %v1986_v46 }
 0x323   : > { %v1089_v38 = vmul.f32 0.5, %v1083_v54  ;;  %v1094_v3 = vmul.f32 %v1088_v62, %v1030_v41  ;;  %v1466_v41 = vld [vmem:[%s2809_s25] ss:$0 sm:$0xff] }
 0x325   : > { %v1095_v39 = vmul.f32 %v1089_v38, %v1033_v55 }
 0x327   : > { %v1099_v17 = vpack.c.bf16 %v1095_v39, %v1094_v3 }
 0x329   : > { %1549 = vmatmul.mubr.bf16.gmra.mrb[4].mxu1 %v1099_v17  ;;  %v1724_v36 = vpop.eup %1723 }
 0x32a   : > { %1552 = vmatprep.mubr.msk.bf16.mxu1 %vm1987_vm7, %v1986_v46  ;;  %v1084_v18 = vadd.f32 1.0, %v1724_v36 }
 0x32b   : > { %v1726_v8 = vpop.eup %1725 }
 0x32c   : > { %v1085_v27 = vadd.f32 1.0, %v1726_v8  ;;  %v1090_v48 = vmul.f32 0.5, %v1084_v18 }
 0x32e   : > { %v1091_v43 = vmul.f32 0.5, %v1085_v27  ;;  %v1096_v44 = vmul.f32 %v1090_v48, %v1038_v30 }
 0x330   : > { %v1097_v49 = vmul.f32 %v1091_v43, %v1041_v50 }
 0x332   : > { %v1100_v53 = vpack.c.bf16 %v1097_v49, %v1096_v44 }
 0x334   : > { %1553 = vmatmul.mubr.bf16.gmra.mrb[8].mxu1 %v1100_v53 }
 0x3f4   : > { %v1206_v55 = vpop.f32.mrb[0].mxu1 }
 0x3f5   : > { %v1207_v6 = vadd.f32 %v1466_v41, %v1206_v55  ;;  %v1546_v57 = vpop.f32.mrb[1].mxu1 }
 0x3f6   : > { %v1209_v58 = vpop.f32.mrb[2].mxu1 }
 0x3f7   : > { %v1235_v59 = vrot.slane %v1207_v6, 5  ;;  %v1210_v46 = vadd.f32 %v1466_v41, %v1209_v58  ;;  %v1547_v23 = vpop.f32.mrb[3].mxu1 }
 0x3f9   : > { %v1253_v0 = vadd.f32 %v1235_v59, %v2328_v9  ;;  %v1236_v28 = vrot.slane %v1210_v46, 5 }
 0x3fb   : > { %1260 = vst [vmem:[%s2649_s30 - $0x3] sm:$0xf8] %v1253_v0  ;;  %v1237_v32 = vsel %vm727_vm4, %v1235_v59, %v1236_v28 }
 0x3fc   : > { %v1254_v61 = vadd.f32 %v1237_v32, %v2331_v10  ;;  %v1214_v45 = vpop.f32.mrb[4].mxu1 }
 0x3fd   : > { %v1215_v42 = vadd.f32 %v1466_v41, %v1214_v45  ;;  %v1550_v34 = vpop.f32.mrb[5].mxu1 }
 0x3fe   : > { %1261 = vst [vmem:[%s2649_s30 + $0x5] sm:$0xff] %v1254_v61  ;;  %v1217_v9 = vpop.f32.mrb[6].mxu1 }
 0x3ff   : > { %v1238_v30 = vrot.slane %v1215_v42, 5  ;;  %v1218_v25 = vadd.f32 %v1466_v41, %v1217_v9  ;;  %v1551_v22 = vpop.f32.mrb[7].mxu1 }
 0x401   : > { %v1239_v63 = vsel %vm727_vm4, %v1236_v28, %v1238_v30  ;;  %v1240_v47 = vrot.slane %v1218_v25, 5 }
 0x402   : > { %v1255_v50 = vadd.f32 %v1239_v63, %v2378_v31 }
 0x403   : > { %v1241_v60 = vsel %vm727_vm4, %v1238_v30, %v1240_v47 }
 0x404   : > { %1262 = vst [vmem:[%s2649_s30 + $0xd] sm:$0xff] %v1255_v50  ;;  %v1256_v10 = vadd.f32 %v1241_v60, %v2391_v40 }
 0x406   : > { %1263 = vst [vmem:[%s2649_s30 + $0x15] sm:$0xff] %v1256_v10 }
 0x407   : > { %v1222_v1 = vpop.f32.mrb[8].mxu1 }
 0x408   : > { %v1223_v37 = vadd.f32 %v1466_v41, %v1222_v1  ;;  %v1554_v2 = vpop.f32.mrb[9].mxu1 }
 0x409   : > { %v1225_v4 = vpop.f32.mrb[10].mxu1 }
 0x40a   : > { %v1242_v12 = vrot.slane %v1223_v37, 5  ;;  %v1226_v31 = vadd.f32 %v1466_v41, %v1225_v4  ;;  %v1555_v5 = vpop.f32.mrb[11].mxu1 }
 0x40c   : > { %v1243_v11 = vsel %vm727_vm4, %v1240_v47, %v1242_v12  ;;  %v1244_v40 = vrot.slane %v1226_v31, 5 }
 0x40d   : > { %v1257_v19 = vadd.f32 %v1243_v11, %v2471_v51 }
 0x40e   : > { %v1245_v14 = vsel %vm727_vm4, %v1242_v12, %v1244_v40  ;;  %v1259_v52 = vadd.f32 %v1244_v40, %v2537_v56 }
 0x40f   : > { %1264 = vst [vmem:[%s2649_s30 + $0x1d] sm:$0xff] %v1257_v19  ;;  %v1258_v20 = vadd.f32 %v1245_v14, %v2507_v21 }
 0x410   : > { %1266 = vst [vmem:[%s2649_s30 + $0x2d] sm:$0x7] %v1259_v52 }
 0x411   : > { %1265 = vst [vmem:[%s2649_s30 + $0x25] sm:$0xff] %v1258_v20 }
 0x412   : > { %1853 = shalt.err (!%p1850_p11)
}
 0x413   : > { %s1854_s13 = scalar_lea.hbm %s2675_s3, 768  ;;  %s1858_s25 = scalar_lea.hbm %s2812_s4, 4608 }
 0x414   : > { %p1855_p3 = scmp.ne.s32.totalorder %s2675_s3, %s1854_s13  ;;  %p1859_p10 = scmp.lt.u32.totalorder %s2675_s3, %s2812_s4 }
 0x415   : > { %p1860_p5 = scmp.lt.u32.totalorder %s1858_s25, %s1854_s13  ;;  %p1862_p2 = scmp.lt.u32.totalorder %s1854_s13, %s2675_s3 }
 0x416   : > { %p1856_p0 = pnand %p1855_p3, %p2813_p9 }
 0x417   : > { %p1861_p8 = por %p1860_p5, %p1859_p10 }
 0x418   : > { %p1857_p4 = pneg %p1856_p0 }
 0x419   : > { %p1863_p1 = por %p1862_p2, %p1861_p8 }
 0x41b   : > { %p1864_p6 = pnand %p1863_p1, %p1857_p4 }
 0x41d   : > { %1867 = shalt.err (!%p1864_p6)
}
 0x41e   : > { %s1989_s20 = smov 128   ;;  %s1990_s6 = smov 8  }
 0x41f   : > { %1571 = dma.vmem_to_hbm [thread:$0]  (%p2813_p9), %s2665_s27, 768, %s2675_s3, %s1268_s28, %s1989_s20, %s1989_s20, %s1990_s6  }
 0x420 PF: > { %s2814_s8 = sld [smem:[#allocation16_spill]]  ;;  %s2815_s26 = sld [smem:[#allocation24_spill]] }
 0x421   : > { %p1588_p12 = scmp.ge.s32.totalorder %s1976_s23, 2 }
 0x426   : > { %s1298_s12 = sand.u32 1, %s2814_s8   ;;  %p2816_p7 = scmp.ne.s32.totalorder %s2815_s26, 0 }
 0x427   : > { %s1299_s19 = scalar_lea.sflag [#allocation4], %s1298_s12 }
 0x428   : > { %p1581_p13 = pnand %p1588_p12, %p2816_p7 }
 0x42a   : > { %1929 = dma.done.wait (!%p1581_p13), %s1299_s19, 768  }
 0x42b   : > { %1931 = vsyncadd (!%p1581_p13), %s1299_s19, 4294966528  ;;  %s30_s23 = sadd.s32 1, %s1976_s23   ;;  %s2817_s9 = sld [smem:[#allocation22_spill]] }
 0x42c   : > { %p27_p11 = scmp.ge.s32.totalorder %s30_s23, 8   ;;  %s2818_s27 = sld [smem:[#allocation21_spill]] }
 0x42d   : > { %s2819_s10 = sld [smem:[#allocation19_spill]]  ;;  %s2820_s3 = sld [smem:[#allocation20_spill]] }
 0x42e   : > { %s2821_s13 = smov %s1940_s14  ;;  %s2822_s14 = smov %s1944_s15 }
 0x42f   : > { %s2824_s16 = smov %s1952_s17  ;;  %s2825_s17 = smov %s1956_s18 }
 0x430   : > { %s2827_s19 = smov %s1968_s21  ;;  %s2828_s20 = smov %s1972_s22 }
 0x431   : > { %s2823_s15 = smov %s2817_s9  ;;  %29 = sbr.rel (!%p27_p11) target bundleno = 22 (0x16), region = 132 }
 0x432   : > { %s2826_s18 = smov %s2818_s27 }
 0x433   : > { %s2829_s21 = smov %s2819_s10  ;;  %s2830_s22 = smov %s2820_s3 }
 0x438   :  { %1304 = vsyncpa [#allocation3], 1 }
 0x439   :  { %1306 = vsyncpa [#allocation3 + $0x1], 1 }
 0x43a   :  { %1307 = vsyncpa [#allocation6], 1 }
 0x43b   :  { %1309 = vsyncpa [#allocation6 + $0x1], 1 }
 0x43c   :  { %1310 = vsyncpa [#allocation9], 1 }
 0x43d   :  { %1311 = vsyncpa [#allocation4], 1 }
 0x43e   :  { %1313 = vsyncpa [#allocation4 + $0x1], 1 }

</bundles_post_ra>
